<compile_context>
chip_gen: v7x
topology: tpu7x:2x2x1
jax: 0.10.0
libtpu: 0.0.40
codegen_flags: <defaults>
</compile_context>

<pallas_src>
import jax
import jax.numpy as jnp
from jax.experimental import pallas as pl
from jax.experimental.pallas import tpu as pltpu


CNN_FEAT = 64
TRAD_FEAT = 32
TOTAL_IN = CNN_FEAT + TRAD_FEAT       # 96
ACTION_SIZE = 280
PAD_OUT = 384                         # 3 x 128 lane-dense output width
HIDDEN = 256
HALF_HIDDEN = HIDDEN // 2             # 128
ROW_GRANULE = 128                     # MXU row granule; batch tiles are multiples of this
MAX_TILE_GRANULES = 4                 # cap batch tile at 512 rows
INV_ACTIONS = 1.0 / float(ACTION_SIZE)


def dqn_kernel(
    xc_ref,                             # (TILE_B, 64)  bf16  cnn features
    xt_ref,                             # (TILE_B, 32)  bf16  traditional features
    w1c_ref, w1t_ref, b1_ref,           # (64,256) bf16, (32,256) bf16, (1,256) f32
    w2_ref, b2_ref,                     # (256,256) bf16, (1,256) f32
    wva1_ref, bva1_ref,                 # (256,256) bf16, (1,256) f32  ([value | advantage])
    wv2_ref, bv2_ref,                   # (1,128) bf16, (1,1) f32 in SMEM
    wa2_ref, ba2_ref,                   # (128,384) bf16, (1,384) f32 (zero in pad lanes)
    q_ref,                              # (TILE_B, 384) f32
):
    # --- feature fusion layer 1: split-K over the two input streams (no concat/pad) ---
    h1 = jnp.dot(xc_ref[...], w1c_ref[...], preferred_element_type=jnp.float32)
    h1 = h1 + jnp.dot(xt_ref[...], w1t_ref[...], preferred_element_type=jnp.float32)
    h1 = jnp.maximum(h1 + b1_ref[...], 0.0)
    # Dropout(0.3) identity in eval.

    # --- feature fusion layer 2 (bf16 x bf16 MXU, f32 accumulate) ---
    feat = jnp.maximum(
        jnp.dot(h1.astype(jnp.bfloat16), w2_ref[...],
                preferred_element_type=jnp.float32) + b2_ref[...], 0.0)
    # Dropout(0.2) identity in eval.

    # --- fused first layers of value/advantage streams: one 256x256 matmul ---
    va = jnp.maximum(
        jnp.dot(feat.astype(jnp.bfloat16), wva1_ref[...],
                preferred_element_type=jnp.float32) + bva1_ref[...], 0.0)
    v1 = va[:, :HALF_HIDDEN]            # (TILE_B, 128) f32
    a1 = va[:, HALF_HIDDEN:]            # (TILE_B, 128) f32

    # --- value head (128 -> 1): VPU multiply + XLU lane reduction; MXU stays free ---
    wv2 = wv2_ref[...].astype(jnp.float32)                              # (1, 128), tiny
    value = jnp.sum(v1 * wv2, axis=-1, keepdims=True) + bv2_ref[0, 0]   # (TILE_B, 1)

    # --- advantage head (128 -> 384 padded); pad lanes are exactly zero ---
    adv = jnp.dot(a1.astype(jnp.bfloat16), wa2_ref[...],
                  preferred_element_type=jnp.float32) + ba2_ref[...]    # (TILE_B, 384)

    # --- dueling aggregation; mean over the true 280 actions (pad lanes are zero) ---
    adv_mean = jnp.sum(adv, axis=-1, keepdims=True) * INV_ACTIONS
    q_ref[...] = value + adv - adv_mean


def _pick_tiling(batch):
    """Pick (batch tile, padded batch).

    Tile is a multiple of 128 capped at 512 rows (amortizes ~0.35us per-step
    overhead), while keeping >= 2 grid steps whenever the batch spans >= 2 row
    granules so ("parallel",) semantics can use both TensorCores on v7x.
    """
    granules = -(-batch // ROW_GRANULE)                        # ceil div
    tiles_per_step = max(1, min(MAX_TILE_GRANULES, granules // 2))
    tile_b = tiles_per_step * ROW_GRANULE
    steps = -(-granules // tiles_per_step)
    return tile_b, steps * tile_b


@jax.jit
def cnn_enhanced_dqn_forward(cnn_features, traditional_features, params):
    B = cnn_features.shape[0]
    tile_b, b_pad = _pick_tiling(B)

    # bf16 inputs (halves input DMA); only batch rows are padded — no feature concat/pad.
    xc = jnp.pad(cnn_features.astype(jnp.bfloat16), ((0, b_pad - B), (0, 0)))
    xt = jnp.pad(traditional_features.astype(jnp.bfloat16), ((0, b_pad - B), (0, 0)))

    weights = (
        params["w1c"], params["w1t"], params["b1"],
        params["w2"], params["b2"],
        params["wva1"], params["bva1"],
        params["wv2"], params["bv2"],
        params["wa2"], params["ba2"],
    )

    nbytes = lambda a: a.size * a.dtype.itemsize
    flops = 2 * b_pad * (TOTAL_IN * HIDDEN + HIDDEN * HIDDEN + HIDDEN * HIDDEN
                         + HALF_HIDDEN * PAD_OUT + HALF_HIDDEN)
    bytes_accessed = (nbytes(xc) + nbytes(xt) + b_pad * PAD_OUT * 4
                      + sum(nbytes(w) for w in weights))

    # Weights/biases: constant index map -> resident in VMEM, no per-step re-DMA.
    const = lambda i: (0, 0)
    q_pad = pl.pallas_call(
        dqn_kernel,
        out_shape=jax.ShapeDtypeStruct((b_pad, PAD_OUT), jnp.float32),
        grid_spec=pltpu.PrefetchScalarGridSpec(
            num_scalar_prefetch=0,
            grid=(b_pad // tile_b,),
            in_specs=[
                pl.BlockSpec((tile_b, CNN_FEAT), lambda i: (i, 0)),     # xc (pipelined over batch)
                pl.BlockSpec((tile_b, TRAD_FEAT), lambda i: (i, 0)),    # xt
                pl.BlockSpec((CNN_FEAT, HIDDEN), const),                # w1c
                pl.BlockSpec((TRAD_FEAT, HIDDEN), const),               # w1t
                pl.BlockSpec((1, HIDDEN), const),                       # b1
                pl.BlockSpec((HIDDEN, HIDDEN), const),                  # w2
                pl.BlockSpec((1, HIDDEN), const),                       # b2
                pl.BlockSpec((HIDDEN, HIDDEN), const),                  # wva1
                pl.BlockSpec((1, HIDDEN), const),                       # bva1
                pl.BlockSpec((1, HALF_HIDDEN), const),                  # wv2
                pl.BlockSpec(memory_space=pltpu.MemorySpace.SMEM),      # bv2 scalar
                pl.BlockSpec((HALF_HIDDEN, PAD_OUT), const),            # wa2
                pl.BlockSpec((1, PAD_OUT), const),                      # ba2
            ],
            out_specs=pl.BlockSpec((tile_b, PAD_OUT), lambda i: (i, 0)),
        ),
        compiler_params=pltpu.CompilerParams(
            dimension_semantics=("parallel",)),    # shard batch tiles across TCs (v7x)
        cost_estimate=pl.CostEstimate(
            flops=flops, transcendentals=0, bytes_accessed=bytes_accessed),
    )(xc, xt, *weights)

    # Downstream consumers that accept the lane-padded (b_pad, 384) slab should use
    # q_pad directly; this slice restores exact PyTorch output shape/semantics.
    return q_pad[:B, :ACTION_SIZE]


def init_params(key):
    """PyTorch-Linear-like init (uniform +/- 1/sqrt(fan_in)), repacked into the
    split / fused / padded kernel layout. Weights bf16, biases f32."""
    def linear(k, fan_in, fan_out):
        kw, kb = jax.random.split(k)
        bound = 1.0 / jnp.sqrt(fan_in)
        w = jax.random.uniform(kw, (fan_in, fan_out), jnp.float32, -bound, bound)
        b = jax.random.uniform(kb, (1, fan_out), jnp.float32, -bound, bound)
        return w, b

    keys = jax.random.split(key, 6)
    w1, b1 = linear(keys[0], TOTAL_IN, HIDDEN)                # (96, 256)
    w2, b2 = linear(keys[1], HIDDEN, HIDDEN)                  # (256, 256)
    wv1, bv1 = linear(keys[2], HIDDEN, HALF_HIDDEN)           # (256, 128)
    wv2, bv2 = linear(keys[3], HALF_HIDDEN, 1)                # (128, 1), (1, 1)
    wa1, ba1 = linear(keys[4], HIDDEN, HALF_HIDDEN)           # (256, 128)
    wa2, ba2 = linear(keys[5], HALF_HIDDEN, ACTION_SIZE)      # (128, 280), (1, 280)

    wva1 = jnp.concatenate([wv1, wa1], axis=1)                # (256, 256)
    bva1 = jnp.concatenate([bv1, ba1], axis=1)                # (1, 256)
    wa2_pad = jnp.zeros((HALF_HIDDEN, PAD_OUT), jnp.float32).at[:, :ACTION_SIZE].set(wa2)
    ba2_pad = jnp.zeros((1, PAD_OUT), jnp.float32).at[:, :ACTION_SIZE].set(ba2)

    return {
        "w1c": w1[:CNN_FEAT].astype(jnp.bfloat16),            # (64, 256)
        "w1t": w1[CNN_FEAT:].astype(jnp.bfloat16),             # (32, 256)
        "b1": b1,
        "w2": w2.astype(jnp.bfloat16), "b2": b2,
        "wva1": wva1.astype(jnp.bfloat16), "bva1": bva1,
        "wv2": wv2.T.astype(jnp.bfloat16),                     # (1, 128)
        "bv2": bv2,                                            # (1, 1) f32 (SMEM scalar)
        "wa2": wa2_pad.astype(jnp.bfloat16), "ba2": ba2_pad,
    }


def reference_forward(cnn_features, traditional_features, params):
    """Pure-JAX f32 reference mirroring the PyTorch eval-mode forward, using the
    same bf16-stored weights upcast to f32 (activations kept in f32)."""
    f32 = lambda a: a.astype(jnp.float32)
    with jax.default_matmul_precision("highest"):
        x = jnp.concatenate([cnn_features, traditional_features], axis=1)
        w1 = jnp.concatenate([f32(params["w1c"]), f32(params["w1t"])], axis=0)
        h = jnp.maximum(x @ w1 + params["b1"], 0.0)
        feat = jnp.maximum(h @ f32(params["w2"]) + params["b2"], 0.0)

        wva = f32(params["wva1"]); bva = params["bva1"]
        wv1, wa1 = wva[:, :HALF_HIDDEN], wva[:, HALF_HIDDEN:]
        bv1, ba1 = bva[:, :HALF_HIDDEN], bva[:, HALF_HIDDEN:]

        v1 = jnp.maximum(feat @ wv1 + bv1, 0.0)
        a1 = jnp.maximum(feat @ wa1 + ba1, 0.0)
        value = v1 @ f32(params["wv2"]).T + params["bv2"]
        adv = a1 @ f32(params["wa2"])[:, :ACTION_SIZE] + params["ba2"][:, :ACTION_SIZE]
        return value + adv - jnp.mean(adv, axis=1, keepdims=True)


if __name__ == "__main__":
    key = jax.random.PRNGKey(0)
    k_params, k_data = jax.random.split(key)
    params = init_params(k_params)

    # B=2:   batch padded to a single 128-row tile (1-step grid).
    # B=300: three 128-row tiles (multi-step grid, v7x megacore split).
    # B=1024: 512-row tiles, 2-step grid (exercises the enlarged-tile path).
    for B in (2, 300, 1024):
        kc, kt = jax.random.split(jax.random.fold_in(k_data, B))
        cnn_features = jax.random.normal(kc, (B, CNN_FEAT), jnp.float32)
        traditional_features = jax.random.normal(kt, (B, TRAD_FEAT), jnp.float32)

        q = cnn_enhanced_dqn_forward(cnn_features, traditional_features, params)
        q = jax.block_until_ready(q)
        assert q.shape == (B, ACTION_SIZE), q.shape

        q_ref = reference_forward(cnn_features, traditional_features, params)
        err = float(jnp.max(jnp.abs(q - q_ref)))
        # Kernel rounds activations to bf16 before each matmul (bf16 MXU path);
        # reference keeps f32 activations -> allow a small bf16-rounding tolerance.
        assert err < 1e-2, err

    print("KERNEL_OK")
</pallas_src>

<mosaic_0001>
module attributes {stable_mosaic.version = 11 : i64} {
  func.func @dqn_kernel(%arg0: i32, %arg1: memref<128x64xbf16, #tpu.memory_space<vmem>>, %arg2: memref<128x32xbf16, #tpu.memory_space<vmem>>, %arg3: memref<64x256xbf16, #tpu.memory_space<vmem>>, %arg4: memref<32x256xbf16, #tpu.memory_space<vmem>>, %arg5: memref<1x256xf32, #tpu.memory_space<vmem>>, %arg6: memref<256x256xbf16, #tpu.memory_space<vmem>>, %arg7: memref<1x256xf32, #tpu.memory_space<vmem>>, %arg8: memref<256x256xbf16, #tpu.memory_space<vmem>>, %arg9: memref<1x256xf32, #tpu.memory_space<vmem>>, %arg10: memref<1x128xbf16, #tpu.memory_space<vmem>>, %arg11: memref<1x1xf32, #tpu.memory_space<smem>>, %arg12: memref<128x384xbf16, #tpu.memory_space<vmem>>, %arg13: memref<1x384xf32, #tpu.memory_space<vmem>>, %arg14: memref<128x384xf32, #tpu.memory_space<vmem>>) attributes {dimension_semantics = [#tpu.dimension_semantics<parallel>], iteration_bounds = array<i64: 1>, scalar_prefetch = 0 : i64, scratch_operands = 0 : i64, tpu.core_type = #tpu.core_type<tc>, window_params = [{transform_indices = @transform_0, window_bounds = array<i64: 128, 64>}, {transform_indices = @transform_1, window_bounds = array<i64: 128, 32>}, {pipeline_mode = #tpu.pipeline_mode<synchronous>, transform_indices = @transform_2, window_bounds = array<i64: 64, 256>}, {pipeline_mode = #tpu.pipeline_mode<synchronous>, transform_indices = @transform_3, window_bounds = array<i64: 32, 256>}, {pipeline_mode = #tpu.pipeline_mode<synchronous>, transform_indices = @transform_4, window_bounds = array<i64: 1, 256>}, {pipeline_mode = #tpu.pipeline_mode<synchronous>, transform_indices = @transform_5, window_bounds = array<i64: 256, 256>}, {pipeline_mode = #tpu.pipeline_mode<synchronous>, transform_indices = @transform_6, window_bounds = array<i64: 1, 256>}, {pipeline_mode = #tpu.pipeline_mode<synchronous>, transform_indices = @transform_7, window_bounds = array<i64: 256, 256>}, {pipeline_mode = #tpu.pipeline_mode<synchronous>, transform_indices = @transform_8, window_bounds = array<i64: 1, 256>}, {pipeline_mode = #tpu.pipeline_mode<synchronous>, transform_indices = @transform_9, window_bounds = array<i64: 1, 128>}, {transform_indices = @transform_10, window_bounds = array<i64: 1, 1>}, {pipeline_mode = #tpu.pipeline_mode<synchronous>, transform_indices = @transform_11, window_bounds = array<i64: 128, 384>}, {pipeline_mode = #tpu.pipeline_mode<synchronous>, transform_indices = @transform_12, window_bounds = array<i64: 1, 384>}, {transform_indices = @transform_13, window_bounds = array<i64: 128, 384>}]} {
    %c0 = arith.constant 0 : index
    %c0_0 = arith.constant 0 : index
    %0 = vector.load %arg1[%c0, %c0_0] : memref<128x64xbf16, #tpu.memory_space<vmem>>, vector<128x64xbf16>
    %c0_1 = arith.constant 0 : index
    %c0_2 = arith.constant 0 : index
    %1 = vector.load %arg3[%c0_1, %c0_2] : memref<64x256xbf16, #tpu.memory_space<vmem>>, vector<64x256xbf16>
    %cst = arith.constant dense<0.000000e+00> : vector<128x256xf32>
    %2 = tpu.matmul %0, %1, %cst {dimension_numbers = #tpu.dot_dimension_numbers<[1], [0], [0], [1], [0, 0, 1, 1], [], []>} : vector<128x64xbf16>, vector<64x256xbf16>, vector<128x256xf32> -> vector<128x256xf32>
    %c0_3 = arith.constant 0 : index
    %c0_4 = arith.constant 0 : index
    %3 = vector.load %arg2[%c0_3, %c0_4] : memref<128x32xbf16, #tpu.memory_space<vmem>>, vector<128x32xbf16>
    %c0_5 = arith.constant 0 : index
    %c0_6 = arith.constant 0 : index
    %4 = vector.load %arg4[%c0_5, %c0_6] : memref<32x256xbf16, #tpu.memory_space<vmem>>, vector<32x256xbf16>
    %cst_7 = arith.constant dense<0.000000e+00> : vector<128x256xf32>
    %5 = tpu.matmul %3, %4, %cst_7 {dimension_numbers = #tpu.dot_dimension_numbers<[1], [0], [0], [1], [0, 0, 1, 1], [], []>} : vector<128x32xbf16>, vector<32x256xbf16>, vector<128x256xf32> -> vector<128x256xf32>
    %6 = arith.addf %2, %5 : vector<128x256xf32>
    %c0_8 = arith.constant 0 : index
    %c0_9 = arith.constant 0 : index
    %7 = vector.load %arg5[%c0_8, %c0_9] : memref<1x256xf32, #tpu.memory_space<vmem>>, vector<1x256xf32>
    %8 = vector.broadcast %7 : vector<1x256xf32> to vector<128x256xf32>
    %9 = arith.addf %6, %8 : vector<128x256xf32>
    %cst_10 = arith.constant 0.000000e+00 : f32
    %10 = vector.broadcast %cst_10 : f32 to vector<128x256xf32>
    %11 = arith.maximumf %9, %10 : vector<128x256xf32>
    %12 = arith.truncf %11 : vector<128x256xf32> to vector<128x256xbf16>
    %c0_11 = arith.constant 0 : index
    %c0_12 = arith.constant 0 : index
    %13 = vector.load %arg6[%c0_11, %c0_12] : memref<256x256xbf16, #tpu.memory_space<vmem>>, vector<256x256xbf16>
    %cst_13 = arith.constant dense<0.000000e+00> : vector<128x256xf32>
    %14 = tpu.matmul %12, %13, %cst_13 {dimension_numbers = #tpu.dot_dimension_numbers<[1], [0], [0], [1], [0, 0, 1, 1], [], []>} : vector<128x256xbf16>, vector<256x256xbf16>, vector<128x256xf32> -> vector<128x256xf32>
    %c0_14 = arith.constant 0 : index
    %c0_15 = arith.constant 0 : index
    %15 = vector.load %arg7[%c0_14, %c0_15] : memref<1x256xf32, #tpu.memory_space<vmem>>, vector<1x256xf32>
    %16 = vector.broadcast %15 : vector<1x256xf32> to vector<128x256xf32>
    %17 = arith.addf %14, %16 : vector<128x256xf32>
    %cst_16 = arith.constant 0.000000e+00 : f32
    %18 = vector.broadcast %cst_16 : f32 to vector<128x256xf32>
    %19 = arith.maximumf %17, %18 : vector<128x256xf32>
    %20 = arith.truncf %19 : vector<128x256xf32> to vector<128x256xbf16>
    %c0_17 = arith.constant 0 : index
    %c0_18 = arith.constant 0 : index
    %21 = vector.load %arg8[%c0_17, %c0_18] : memref<256x256xbf16, #tpu.memory_space<vmem>>, vector<256x256xbf16>
    %cst_19 = arith.constant dense<0.000000e+00> : vector<128x256xf32>
    %22 = tpu.matmul %20, %21, %cst_19 {dimension_numbers = #tpu.dot_dimension_numbers<[1], [0], [0], [1], [0, 0, 1, 1], [], []>} : vector<128x256xbf16>, vector<256x256xbf16>, vector<128x256xf32> -> vector<128x256xf32>
    %c0_20 = arith.constant 0 : index
    %c0_21 = arith.constant 0 : index
    %23 = vector.load %arg9[%c0_20, %c0_21] : memref<1x256xf32, #tpu.memory_space<vmem>>, vector<1x256xf32>
    %24 = vector.broadcast %23 : vector<1x256xf32> to vector<128x256xf32>
    %25 = arith.addf %22, %24 : vector<128x256xf32>
    %cst_22 = arith.constant 0.000000e+00 : f32
    %26 = vector.broadcast %cst_22 : f32 to vector<128x256xf32>
    %27 = arith.maximumf %25, %26 : vector<128x256xf32>
    %28 = vector.extract_strided_slice %27 {offsets = [0, 0], sizes = [128, 128], strides = [1, 1]} : vector<128x256xf32> to vector<128x128xf32>
    %29 = vector.extract_strided_slice %27 {offsets = [0, 128], sizes = [128, 128], strides = [1, 1]} : vector<128x256xf32> to vector<128x128xf32>
    %c0_23 = arith.constant 0 : index
    %c0_24 = arith.constant 0 : index
    %30 = vector.load %arg10[%c0_23, %c0_24] : memref<1x128xbf16, #tpu.memory_space<vmem>>, vector<1x128xbf16>
    %31 = arith.extf %30 : vector<1x128xbf16> to vector<1x128xf32>
    %32 = vector.broadcast %31 : vector<1x128xf32> to vector<128x128xf32>
    %33 = arith.mulf %28, %32 : vector<128x128xf32>
    %cst_25 = arith.constant dense<0.000000e+00> : vector<128xf32>
    %34 = vector.multi_reduction <add>, %33, %cst_25 [1] : vector<128x128xf32> to vector<128xf32>
    %35 = vector.shape_cast %34 : vector<128xf32> to vector<128x1xf32>
    %c0_26 = arith.constant 0 : index
    %c0_27 = arith.constant 0 : index
    %36 = memref.load %arg11[%c0_26, %c0_27] : memref<1x1xf32, #tpu.memory_space<smem>>
    %37 = vector.broadcast %36 : f32 to vector<128x1xf32>
    %38 = arith.addf %35, %37 : vector<128x1xf32>
    %39 = arith.truncf %29 : vector<128x128xf32> to vector<128x128xbf16>
    %c0_28 = arith.constant 0 : index
    %c0_29 = arith.constant 0 : index
    %40 = vector.load %arg12[%c0_28, %c0_29] : memref<128x384xbf16, #tpu.memory_space<vmem>>, vector<128x384xbf16>
    %cst_30 = arith.constant dense<0.000000e+00> : vector<128x384xf32>
    %41 = tpu.matmul %39, %40, %cst_30 {dimension_numbers = #tpu.dot_dimension_numbers<[1], [0], [0], [1], [0, 0, 1, 1], [], []>} : vector<128x128xbf16>, vector<128x384xbf16>, vector<128x384xf32> -> vector<128x384xf32>
    %c0_31 = arith.constant 0 : index
    %c0_32 = arith.constant 0 : index
    %42 = vector.load %arg13[%c0_31, %c0_32] : memref<1x384xf32, #tpu.memory_space<vmem>>, vector<1x384xf32>
    %43 = vector.broadcast %42 : vector<1x384xf32> to vector<128x384xf32>
    %44 = arith.addf %41, %43 : vector<128x384xf32>
    %cst_33 = arith.constant dense<0.000000e+00> : vector<128xf32>
    %45 = vector.multi_reduction <add>, %44, %cst_33 [1] : vector<128x384xf32> to vector<128xf32>
    %46 = vector.shape_cast %45 : vector<128xf32> to vector<128x1xf32>
    %cst_34 = arith.constant 0.00357142859 : f32
    %47 = vector.broadcast %cst_34 : f32 to vector<128x1xf32>
    %48 = arith.mulf %46, %47 : vector<128x1xf32>
    %49 = vector.broadcast %38 : vector<128x1xf32> to vector<128x384xf32>
    %50 = arith.addf %49, %44 : vector<128x384xf32>
    %51 = vector.broadcast %48 : vector<128x1xf32> to vector<128x384xf32>
    %52 = arith.subf %50, %51 : vector<128x384xf32>
    %c0_35 = arith.constant 0 : index
    %c0_36 = arith.constant 0 : index
    %53 = vector.load %arg14[%c0_35, %c0_36] : memref<128x384xf32, #tpu.memory_space<vmem>>, vector<128x384xf32>
    tpu.vector_store %arg14[%c0_35, %c0_36], %52 {strides = array<i32>} : memref<128x384xf32, #tpu.memory_space<vmem>>, vector<128x384xf32>,
    return
  }
  func.func @transform_0(%arg0: i32) -> (i32, i32) {
    %c0_i32 = arith.constant 0 : i32
    %c0_i32_0 = arith.constant 0 : i32
    return %arg0, %c0_i32 : i32, i32
  }
  func.func @transform_1(%arg0: i32) -> (i32, i32) {
    %c0_i32 = arith.constant 0 : i32
    %c0_i32_0 = arith.constant 0 : i32
    return %arg0, %c0_i32 : i32, i32
  }
  func.func @transform_2(%arg0: i32) -> (i32, i32) {
    %c0_i32 = arith.constant 0 : i32
    %c0_i32_0 = arith.constant 0 : i32
    %c0_i32_1 = arith.constant 0 : i32
    return %c0_i32, %c0_i32_0 : i32, i32
  }
  func.func @transform_3(%arg0: i32) -> (i32, i32) {
    %c0_i32 = arith.constant 0 : i32
    %c0_i32_0 = arith.constant 0 : i32
    %c0_i32_1 = arith.constant 0 : i32
    return %c0_i32, %c0_i32_0 : i32, i32
  }
  func.func @transform_4(%arg0: i32) -> (i32, i32) {
    %c0_i32 = arith.constant 0 : i32
    %c0_i32_0 = arith.constant 0 : i32
    %c0_i32_1 = arith.constant 0 : i32
    return %c0_i32, %c0_i32_0 : i32, i32
  }
  func.func @transform_5(%arg0: i32) -> (i32, i32) {
    %c0_i32 = arith.constant 0 : i32
    %c0_i32_0 = arith.constant 0 : i32
    %c0_i32_1 = arith.constant 0 : i32
    return %c0_i32, %c0_i32_0 : i32, i32
  }
  func.func @transform_6(%arg0: i32) -> (i32, i32) {
    %c0_i32 = arith.constant 0 : i32
    %c0_i32_0 = arith.constant 0 : i32
    %c0_i32_1 = arith.constant 0 : i32
    return %c0_i32, %c0_i32_0 : i32, i32
  }
  func.func @transform_7(%arg0: i32) -> (i32, i32) {
    %c0_i32 = arith.constant 0 : i32
    %c0_i32_0 = arith.constant 0 : i32
    %c0_i32_1 = arith.constant 0 : i32
    return %c0_i32, %c0_i32_0 : i32, i32
  }
  func.func @transform_8(%arg0: i32) -> (i32, i32) {
    %c0_i32 = arith.constant 0 : i32
    %c0_i32_0 = arith.constant 0 : i32
    %c0_i32_1 = arith.constant 0 : i32
    return %c0_i32, %c0_i32_0 : i32, i32
  }
  func.func @transform_9(%arg0: i32) -> (i32, i32) {
    %c0_i32 = arith.constant 0 : i32
    %c0_i32_0 = arith.constant 0 : i32
    %c0_i32_1 = arith.constant 0 : i32
    return %c0_i32, %c0_i32_0 : i32, i32
  }
  func.func @transform_10(%arg0: i32) -> (i32, i32) {
    %c0_i32 = arith.constant 0 : i32
    %c0_i32_0 = arith.constant 0 : i32
    %c0_i32_1 = arith.constant 0 : i32
    return %c0_i32, %c0_i32_0 : i32, i32
  }
  func.func @transform_11(%arg0: i32) -> (i32, i32) {
    %c0_i32 = arith.constant 0 : i32
    %c0_i32_0 = arith.constant 0 : i32
    %c0_i32_1 = arith.constant 0 : i32
    return %c0_i32, %c0_i32_0 : i32, i32
  }
  func.func @transform_12(%arg0: i32) -> (i32, i32) {
    %c0_i32 = arith.constant 0 : i32
    %c0_i32_0 = arith.constant 0 : i32
    %c0_i32_1 = arith.constant 0 : i32
    return %c0_i32, %c0_i32_0 : i32, i32
  }
  func.func @transform_13(%arg0: i32) -> (i32, i32) {
    %c0_i32 = arith.constant 0 : i32
    %c0_i32_0 = arith.constant 0 : i32
    return %arg0, %c0_i32 : i32, i32
  }
}

</mosaic_0001>

<bundles_post_ra>
// kernel: cnn_enhanced_dqn_forward.1
= control target key start
LH: loop header
LB: loop body
LE: loop exit
PB: predicated region body
PF: predicated region fallthrough
CT: control target
= control target key end

     0   :  { %19 = vsyncpa [#allocation4], 0  ;;  %s3424_s0 = inlined_call_operand.vmem [shape: bf16[128,64], index: 0, kind: input, shape index: {}]   ;;  %s3425_s1 = inlined_call_operand.vmem [shape: bf16[128,32], index: 1, kind: input, shape index: {}]   ;;  %s3426_s2 = inlined_call_operand.vmem [shape: bf16[64,256], index: 2, kind: input, shape index: {}]   ;;  %s3427_s3 = inlined_call_operand.vmem [shape: bf16[32,256], index: 3, kind: input, shape index: {}]   ;;  %s3428_s4 = inlined_call_operand.vmem [shape: f32[1,256], index: 4, kind: input, shape index: {}]   ;;  %s3429_s5 = inlined_call_operand.hbm [shape: bf16[256,256], index: 5, kind: input, shape index: {}]   ;;  %s3430_s6 = inlined_call_operand.vmem [shape: f32[1,256], index: 6, kind: input, shape index: {}]   ;;  %s3431_s7 = inlined_call_operand.hbm [shape: bf16[256,256], index: 7, kind: input, shape index: {}]   ;;  %s3432_s8 = inlined_call_operand.vmem [shape: f32[1,256], index: 8, kind: input, shape index: {}]   ;;  %s3433_s9 = inlined_call_operand.vmem [shape: bf16[1,128], index: 9, kind: input, shape index: {}]   ;;  %s3434_s10 = inlined_call_operand.<no memory space> [shape: f32[1,1], index: 10, kind: input, shape index: {}]   ;;  %s3435_s11 = inlined_call_operand.hbm [shape: bf16[128,384], index: 11, kind: input, shape index: {}]   ;;  %s3436_s12 = inlined_call_operand.vmem [shape: f32[1,384], index: 12, kind: input, shape index: {}]   ;;  %s3437_s13 = inlined_call_operand.vmem [shape: f32[128,384], index: 13, kind: output, shape index: {}]  }
   0x1   :  { %20 = vsyncpa [#allocation6], 0  ;;  %s2518_s25 = smov [#allocation5]   ;;  %s2519_s27 = smov [#allocation3]  }
   0x2   :  { %s50_s26 = sshll.u32 %s2518_s25, 4  ;;  %s36_s28 = sshll.u32 %s2519_s27, 4  ;;  %s51_s26 = int_to_ptr.vmem [resolvable:$true] %s50_s26  ;;  %s2596_s28 = int_to_ptr.vmem [resolvable:$true] %s36_s28 }
   0x3   :  { %s2448_s14 = scalar_lea.hbm %s3431_s7, 4096 }
   0x4   :  { %p2449_p0 = scmp.ne.s32.totalorder %s3431_s7, %s2448_s14  ;;  %p2452_p1 = scmp.lt.u32.totalorder %s2448_s14, %s3431_s7 }
   0x6   :  { %p2454_p2 = pnand %p2452_p1, %p2449_p0 }
   0x8   :  { %2457 = shalt.err (!%p2454_p2)
}
   0x9   :  { %s2458_s19 = scalar_lea.vmem %s51_s26, 4096  ;;  %p2463_p4 = scmp.lt.s32.totalorder %s51_s26, %s51_s26 }
   0xa   :  { %p2459_p3 = scmp.ne.s32.totalorder %s51_s26, %s2458_s19  ;;  %p2464_p5 = scmp.lt.s32.totalorder %s2458_s19, %s2458_s19 }
   0xc   :  { %p2465_p6 = por %p2464_p5, %p2463_p4 }
   0xe   :  { %p2466_p7 = pnand %p2465_p6, %p2459_p3 }
  0x10   :  { %2469 = shalt.err (!%p2466_p7)
}
  0x11   :  { %s2520_s20 = smov 128   ;;  %s2521_s21 = smov 8  }
  0x12   :  { %56 = dma.hbm_to_vmem [thread:$0]  %s3431_s7, 4096, %s51_s26, [#allocation6], %s2520_s20, %s2520_s20, %s2521_s21  }
  0x13   :  { %s2470_s27 = scalar_lea.hbm %s3429_s5, 4096 }
  0x14   :  { %p2471_p8 = scmp.ne.s32.totalorder %s3429_s5, %s2470_s27  ;;  %p2474_p9 = scmp.lt.u32.totalorder %s2470_s27, %s3429_s5 }
  0x16   :  { %p2476_p10 = pnand %p2474_p9, %p2471_p8 }
  0x18   :  { %2479 = shalt.err (!%p2476_p10)
}
  0x19   :  { %s2480_s16 = scalar_lea.vmem %s2596_s28, 4096  ;;  %p2485_p12 = scmp.lt.s32.totalorder %s2596_s28, %s2596_s28 }
  0x1a   :  { %p2481_p11 = scmp.ne.s32.totalorder %s2596_s28, %s2480_s16  ;;  %p2486_p13 = scmp.lt.s32.totalorder %s2480_s16, %s2480_s16 }
  0x1c   :  { %p2487_p0 = por %p2486_p13, %p2485_p12 }
  0x1e   :  { %p2488_p1 = pnand %p2487_p0, %p2481_p11 }
  0x20   :  { %2491 = shalt.err (!%p2488_p1)
}
  0x21   :  { %42 = dma.hbm_to_vmem [thread:$0]  %s3429_s5, 4096, %s2596_s28, [#allocation4], %s2520_s20, %s2520_s20, %s2521_s21  }
  0x22   :  { %s2522_s17 = smov [#allocation7]   ;;  %s2492_s23 = scalar_lea.hbm %s3435_s11, 3072 }
  0x23   :  { %s68_s18 = sshll.u32 %s2522_s17, 4  ;;  %p2493_p2 = scmp.ne.s32.totalorder %s3435_s11, %s2492_s23  ;;  %s69_s18 = int_to_ptr.vmem [resolvable:$true] %s68_s18 }
  0x24   :  { %p2496_p3 = scmp.lt.u32.totalorder %s2492_s23, %s3435_s11 }
  0x26   :  { %p2498_p4 = pnand %p2496_p3, %p2493_p2 }
  0x28   :  { %2501 = shalt.err (!%p2498_p4)
}
  0x29   :  { %s2502_s30 = scalar_lea.vmem %s69_s18, 3072  ;;  %p2507_p6 = scmp.lt.s32.totalorder %s69_s18, %s69_s18 }
  0x2a   :  { %p2503_p5 = scmp.ne.s32.totalorder %s69_s18, %s2502_s30  ;;  %p2508_p7 = scmp.lt.s32.totalorder %s2502_s30, %s2502_s30 }
  0x2c   :  { %p2509_p8 = por %p2508_p7, %p2507_p6 }
  0x2e   :  { %p2510_p9 = pnand %p2509_p8, %p2503_p5 }
  0x30   :  { %2513 = shalt.err (!%p2510_p9)
}
  0x31   :  { %s2523_s5 = smov 192   ;;  %s2524_s28 = smov 12  }
  0x32   :  { %74 = dma.hbm_to_vmem [thread:$0]  %s3435_s11, 3072, %s69_s18, [#allocation6], %s2523_s5, %s2523_s5, %s2524_s28  }
  0x33   :  { %2514 = dma.done.wait [#allocation4], 4096  }
  0x34   :  { %2515 = vsyncadd [#allocation4], 4294963200 }
  0x35   :  { %2516 = dma.done.wait [#allocation6], 7168  }
  0x36   :  { %2517 = vsyncadd [#allocation6], 4294960128  ;;  %v2525_v0 = vmov 0   ;;  %v2286_v1 = vld [vmem:[%s3427_s3 + $0x4] ss:$8 sps:$4 sm:$0xff]   ;;  %vm191_vm0 = vcmask 261120   ;;  %v549_v62 = vlaneseq }
  0x37   :  { %248 = vmatprep.mubr.bf16.mxu0 %v2525_v0  ;;  %v2288_v2 = vld [vmem:[%s3427_s3] ss:$8 sps:$4 sm:$0xff]   ;;  %216 = vmatprep.subr.bf16.mxu0 %v2286_v1  ;;  %v2289_v3 = vld [vmem:[%s3427_s3 + $0x14] ss:$8 sps:$4 sm:$0xff]   ;;  %v2291_v4 = vld [vmem:[%s3427_s3 + $0x10] ss:$8 sps:$4 sm:$0xff]  }
  0x38   :  { %217 = vmatpush1.bf16.msra.mxu0 %v2288_v2  ;;  %v2295_v5 = vld [vmem:[%s3426_s2 + $0x4] ss:$8 sps:$4 sm:$0xff]   ;;  %v2293_v7 = vld [vmem:[%s3426_s2] ss:$8 sps:$4 sm:$0xff]   ;;  %v2300_v8 = vld [vmem:[%s3426_s2 + $0x14] ss:$8 sps:$4 sm:$0xff]  }
  0x39   :  { %218 = vmatprep.subr.bf16.mxu0 %v2289_v3  ;;  %v2292_v6 = vld [vmem:[%s3425_s1] sm:$0xff]   ;;  %v2298_v9 = vld [vmem:[%s3426_s2 + $0x10] ss:$8 sps:$4 sm:$0xff]   ;;  %v2296_v11 = vld [vmem:[%s3425_s1 + $0x8] sm:$0xff]   ;;  %vm409_vm1 = vcmask 523264   ;;  %v2756_v63 = vshrl.u32 %v549_v62, 7 }
  0x3a   :  { %v2305_v10 = vld [vmem:[%s3426_s2 + $0x24] ss:$8 sps:$4 sm:$0xff]   ;;  %v2303_v12 = vld [vmem:[%s3426_s2 + $0x20] ss:$8 sps:$4 sm:$0xff]   ;;  %v2310_v13 = vld [vmem:[%s3426_s2 + $0x34] ss:$8 sps:$4 sm:$0xff]  }
  0x3b   :  { %v2308_v14 = vld [vmem:[%s3426_s2 + $0x30] ss:$8 sps:$4 sm:$0xff]   ;;  %v2320_v16 = vld [vmem:[#allocation3 + $0x4] ss:$8 sps:$4 sm:$0xff]   ;;  %v2322_v17 = vld [vmem:[#allocation3] ss:$8 sps:$4 sm:$0xff]  }
  0x3c   :  { %219 = vmatpush1.bf16.msra.mxu0 %v2291_v4  ;;  %v2297_v15 = vld [vmem:[%s3425_s1 + $0x10] sm:$0xff]   ;;  %843 = vmatprep.subr.bf16.mxu1 %v2320_v16  ;;  %v2326_v20 = vld [vmem:[#allocation3 + $0x24] ss:$8 sps:$4 sm:$0xff]   ;;  %v2301_v21 = vld [vmem:[%s3425_s1 + $0x18] sm:$0xff]   ;;  %v2759_v1 = vsub.s32 0, %v2756_v63  ;;  %v2765_v3 = vsub.s32 1, %v2756_v63 }
  0x3d   :  { %434 = vmatprep.subr.bf16.mxu0 %v2295_v5  ;;  %v2323_v18 = vld [vmem:[#allocation3 + $0x14] ss:$8 sps:$4 sm:$0xff]   ;;  %844 = vmatpush1.bf16.msra.mxu1 %v2322_v17  ;;  %v2325_v19 = vld [vmem:[#allocation3 + $0x10] ss:$8 sps:$4 sm:$0xff]   ;;  %v2328_v22 = vld [vmem:[#allocation3 + $0x20] ss:$8 sps:$4 sm:$0xff]  }
  0x3e   :  { %845 = vmatprep.subr.bf16.mxu1 %v2323_v18  ;;  %v2329_v23 = vld [vmem:[#allocation3 + $0x34] ss:$8 sps:$4 sm:$0xff]   ;;  %v2331_v24 = vld [vmem:[#allocation3 + $0x30] ss:$8 sps:$4 sm:$0xff]   ;;  %v2332_v25 = vld [vmem:[#allocation3 + $0x44] ss:$8 sps:$4 sm:$0xff]  }
  0x3f   :  { %2062 = vmatmul.mubr.msk.bf16.vlgmr.msra.gmra.mrb[0].mxu0 %vm191_vm0, %v2292_v6  ;;  %v2302_v26 = vld [vmem:[%s3425_s1 + $0x20] sm:$0xff]   ;;  %v2335_v28 = vld [vmem:[#allocation3 + $0x54] ss:$8 sps:$4 sm:$0xff]   ;;  %v2337_v29 = vld [vmem:[#allocation3 + $0x50] ss:$8 sps:$4 sm:$0xff]  }
  0x40   :  { %435 = vmatpush1.bf16.msra.mxu0 %v2293_v7  ;;  %258 = vmatprep.mubr.bf16.mxu0 %v2525_v0  ;;  %v2334_v27 = vld [vmem:[#allocation3 + $0x40] ss:$8 sps:$4 sm:$0xff]   ;;  %v2338_v30 = vld [vmem:[#allocation3 + $0x64] ss:$8 sps:$4 sm:$0xff]   ;;  %v2341_v33 = vld [vmem:[#allocation3 + $0x74] ss:$8 sps:$4 sm:$0xff]  }
  0x41   :  { %436 = vmatprep.subr.bf16.mxu0 %v2300_v8  ;;  %846 = vmatpush1.bf16.msra.mxu1 %v2325_v19  ;;  %v2306_v31 = vld [vmem:[%s3425_s1 + $0x28] sm:$0xff]   ;;  %v2343_v34 = vld [vmem:[#allocation3 + $0x70] ss:$8 sps:$4 sm:$0xff]   ;;  %v2347_v38 = vld [vmem:[#allocation3 + $0x94] ss:$8 sps:$4 sm:$0xff]  }
  0x42   :  { %847 = vmatprep.subr.bf16.mxu1 %v2326_v20  ;;  %v2340_v32 = vld [vmem:[#allocation3 + $0x60] ss:$8 sps:$4 sm:$0xff]   ;;  %v2344_v35 = vld [vmem:[#allocation3 + $0x84] ss:$8 sps:$4 sm:$0xff]   ;;  %v2307_v36 = vld [vmem:[%s3425_s1 + $0x30] sm:$0xff]  }
  0x43   :  { %v2346_v37 = vld [vmem:[#allocation3 + $0x80] ss:$8 sps:$4 sm:$0xff]   ;;  %v2349_v39 = vld [vmem:[#allocation3 + $0x90] ss:$8 sps:$4 sm:$0xff]   ;;  %v2350_v40 = vld [vmem:[#allocation3 + $0xa4] ss:$8 sps:$4 sm:$0xff]  }
  0x44   :  { %437 = vmatpush1.bf16.msra.mxu0 %v2298_v9  ;;  %v2311_v41 = vld [vmem:[%s3425_s1 + $0x38] sm:$0xff]   ;;  %v2352_v42 = vld [vmem:[#allocation3 + $0xa0] ss:$8 sps:$4 sm:$0xff]   ;;  %v2356_v45 = vld [vmem:[#allocation3 + $0xc4] ss:$8 sps:$4 sm:$0xff]  }
  0x45   :  { %438 = vmatprep.subr.bf16.mxu0 %v2305_v10  ;;  %848 = vmatpush1.bf16.msra.mxu1 %v2328_v22  ;;  %v2353_v43 = vld [vmem:[#allocation3 + $0xb4] ss:$8 sps:$4 sm:$0xff]   ;;  %v2355_v44 = vld [vmem:[#allocation3 + $0xb0] ss:$8 sps:$4 sm:$0xff]   ;;  %v2312_v46 = vld [vmem:[%s3424_s0] sm:$0xff]  }
  0x46   :  { %849 = vmatprep.subr.bf16.mxu1 %v2329_v23  ;;  %v2358_v47 = vld [vmem:[#allocation3 + $0xc0] ss:$8 sps:$4 sm:$0xff]   ;;  %v2359_v48 = vld [vmem:[#allocation3 + $0xd4] ss:$8 sps:$4 sm:$0xff]   ;;  %v2361_v56 = vld [vmem:[#allocation3 + $0xd0] ss:$8 sps:$4 sm:$0xff]  }
  0x47   :  { %2063 = vmatmul.mubr.msk.bf16.gmra.mrb[4].mxu0 %vm191_vm0, %v2296_v11  ;;  %v2313_v49 = vld [vmem:[%s3424_s0 + $0x8] sm:$0xff]   ;;  %v2314_v50 = vld [vmem:[%s3424_s0 + $0x10] sm:$0xff]   ;;  %v2315_v51 = vld [vmem:[%s3424_s0 + $0x18] sm:$0xff]  }
  0x48   :  { %268 = vmatprep.mubr.bf16.mxu0 %v2525_v0  ;;  %439 = vmatpush1.bf16.msra.mxu0 %v2303_v12  ;;  %v2316_v52 = vld [vmem:[%s3424_s0 + $0x20] sm:$0xff]   ;;  %v2317_v53 = vld [vmem:[%s3424_s0 + $0x28] sm:$0xff]   ;;  %v2318_v54 = vld [vmem:[%s3424_s0 + $0x30] sm:$0xff]  }
  0x49   :  { %440 = vmatprep.subr.bf16.mxu0 %v2310_v13  ;;  %850 = vmatpush1.bf16.msra.mxu1 %v2331_v24  ;;  %v2319_v55 = vld [vmem:[%s3424_s0 + $0x38] sm:$0xff]   ;;  %v2362_v57 = vld [vmem:[#allocation3 + $0xe4] ss:$8 sps:$4 sm:$0xff]   ;;  %v2364_v58 = vld [vmem:[#allocation3 + $0xe0] ss:$8 sps:$4 sm:$0xff]  }
  0x4a   :  { %851 = vmatprep.subr.bf16.mxu1 %v2332_v25  ;;  %v2365_v59 = vld [vmem:[#allocation3 + $0xf4] ss:$8 sps:$4 sm:$0xff]   ;;  %v2367_v60 = vld [vmem:[#allocation3 + $0xf0] ss:$8 sps:$4 sm:$0xff]   ;;  %v2370_v61 = vld [vmem:[#allocation5 + $0x4] ss:$8 sps:$4 sm:$0xff]  }
  0x4b   :  { %v547_v2 = vld [vmem:[%s3428_s4] sm:$0x3]  ;;  %v2373_v24 = vld [vmem:[#allocation5 + $0x14] ss:$8 sps:$4 sm:$0xff]  }
  0x4c   :  { %441 = vmatpush1.bf16.msra.mxu0 %v2308_v14  ;;  %v2768_v4 = vrot.slane %v547_v2, %v2759_v1  ;;  %v2771_v5 = vrot.slane %v547_v2, %v2765_v3 }
  0x4d   :  { %852 = vmatpush1.bf16.msra.mxu1 %v2334_v27 }
  0x4e   :  { %853 = vmatprep.subr.bf16.mxu1 %v2335_v28 }
  0x4f   :  { %2064 = vmatmul.mubr.msk.bf16.gmra.mrb[8].mxu0 %vm191_vm0, %v2297_v15 }
  0x50   :  { %278 = vmatprep.mubr.bf16.mxu0 %v2525_v0 }
  0x51   :  { %854 = vmatpush1.bf16.msra.mxu1 %v2337_v29 }
  0x52   :  { %855 = vmatprep.subr.bf16.mxu1 %v2338_v30  ;;  %v2371_v30 = vld [vmem:[#allocation5 + $0x10] ss:$8 sps:$4 sm:$0xff]  }
  0x55   :  { %856 = vmatpush1.bf16.msra.mxu1 %v2340_v32 }
  0x56   :  { %857 = vmatprep.subr.bf16.mxu1 %v2341_v33  ;;  %v2376_v33 = vld [vmem:[#allocation5 + $0x24] ss:$8 sps:$4 sm:$0xff]  }
  0x57   :  { %2065 = vmatmul.mubr.msk.bf16.gmra.mrb[12].mxu0 %vm191_vm0, %v2301_v21  ;;  %v2368_v21 = vld [vmem:[#allocation5] ss:$8 sps:$4 sm:$0xff]  }
  0x58   :  { %288 = vmatprep.mubr.bf16.mxu0 %v2525_v0 }
  0x59   :  { %858 = vmatpush1.bf16.msra.mxu1 %v2343_v34 }
  0x5a   :  { %859 = vmatprep.subr.bf16.mxu1 %v2344_v35 }
  0x5d   :  { %860 = vmatpush1.bf16.msra.mxu1 %v2346_v37 }
  0x5e   :  { %861 = vmatprep.subr.bf16.mxu1 %v2347_v38 }
  0x5f   :  { %2066 = vmatmul.mubr.msk.bf16.gmra.mrb[16].mxu0 %vm191_vm0, %v2302_v26 }
  0x60   :  { %298 = vmatprep.mubr.bf16.mxu0 %v2525_v0 }
  0x61   :  { %862 = vmatpush1.bf16.msra.mxu1 %v2349_v39  ;;  %v2374_v39 = vld [vmem:[#allocation5 + $0x20] ss:$8 sps:$4 sm:$0xff]  }
  0x62   :  { %863 = vmatprep.subr.bf16.mxu1 %v2350_v40 }
  0x65   :  { %864 = vmatpush1.bf16.msra.mxu1 %v2352_v42  ;;  %v2379_v42 = vld [vmem:[#allocation5 + $0x34] ss:$8 sps:$4 sm:$0xff]  }
  0x66   :  { %865 = vmatprep.subr.bf16.mxu1 %v2353_v43 }
  0x67   :  { %2067 = vmatmul.mubr.msk.bf16.gmra.mrb[20].mxu0 %vm191_vm0, %v2306_v31 }
  0x68   :  { %308 = vmatprep.mubr.bf16.mxu0 %v2525_v0 }
  0x69   :  { %866 = vmatpush1.bf16.msra.mxu1 %v2355_v44 }
  0x6a   :  { %867 = vmatprep.subr.bf16.mxu1 %v2356_v45 }
  0x6d   :  { %868 = vmatpush1.bf16.msra.mxu1 %v2358_v47 }
  0x6e   :  { %869 = vmatprep.subr.bf16.mxu1 %v2359_v48  ;;  %v2377_v48 = vld [vmem:[#allocation5 + $0x30] ss:$8 sps:$4 sm:$0xff]  }
  0x6f   :  { %2068 = vmatmul.mubr.msk.bf16.gmra.mrb[24].mxu0 %vm191_vm0, %v2307_v36 }
  0x70   :  { %318 = vmatprep.mubr.bf16.mxu0 %v2525_v0 }
  0x71   :  { %870 = vmatpush1.bf16.msra.mxu1 %v2361_v56 }
  0x72   :  { %871 = vmatprep.subr.bf16.mxu1 %v2362_v57  ;;  %v2380_v57 = vld [vmem:[#allocation5 + $0x40] ss:$8 sps:$4 sm:$0xff]  }
  0x75   :  { %872 = vmatpush1.bf16.msra.mxu1 %v2364_v58 }
  0x76   :  { %873 = vmatprep.subr.bf16.mxu1 %v2365_v59 }
  0x77   :  { %2069 = vmatmul.mubr.msk.bf16.gmra.mrb[28].mxu0 %vm191_vm0, %v2311_v41 }
  0x78   :  { %466 = vmatprep.mubr.bf16.mxu0 %v2525_v0 }
  0x79   :  { %874 = vmatpush1.bf16.msra.mxu1 %v2367_v60  ;;  %v2385_v60 = vld [vmem:[#allocation5 + $0x54] ss:$8 sps:$4 sm:$0xff]  }
  0x7a   :  { %1208 = vmatprep.subr.bf16.mxu1 %v2370_v61 }
  0x7f   :  { %2086 = vmatmul.mubr.msk.bf16.vlgmr.msra.gmra.mrb[0].mxu0 %vm409_vm1, %v2312_v46 }
  0x80   :  { %476 = vmatprep.mubr.bf16.mxu0 %v2525_v0 }
  0x87   :  { %2087 = vmatmul.mubr.msk.bf16.gmra.mrb[4].mxu0 %vm409_vm1, %v2313_v49 }
  0x88   :  { %486 = vmatprep.mubr.bf16.mxu0 %v2525_v0 }
  0x8f   :  { %2088 = vmatmul.mubr.msk.bf16.gmra.mrb[8].mxu0 %vm409_vm1, %v2314_v50 }
  0x90   :  { %496 = vmatprep.mubr.bf16.mxu0 %v2525_v0 }
  0x97   :  { %2089 = vmatmul.mubr.msk.bf16.gmra.mrb[12].mxu0 %vm409_vm1, %v2315_v51  ;;  %v2382_v51 = vld [vmem:[#allocation5 + $0x44] ss:$8 sps:$4 sm:$0xff]  }
  0x98   :  { %506 = vmatprep.mubr.bf16.mxu0 %v2525_v0 }
  0x9f   :  { %2090 = vmatmul.mubr.msk.bf16.gmra.mrb[16].mxu0 %vm409_vm1, %v2316_v52 }
  0xa0   :  { %516 = vmatprep.mubr.bf16.mxu0 %v2525_v0 }
  0xa7   :  { %2091 = vmatmul.mubr.msk.bf16.gmra.mrb[20].mxu0 %vm409_vm1, %v2317_v53 }
  0xa8   :  { %526 = vmatprep.mubr.bf16.mxu0 %v2525_v0 }
  0xaf   :  { %2092 = vmatmul.mubr.msk.bf16.gmra.mrb[24].mxu0 %vm409_vm1, %v2318_v54 }
  0xb0   :  { %536 = vmatprep.mubr.bf16.mxu0 %v2525_v0 }
  0xb7   :  { %2093 = vmatmul.mubr.msk.bf16.gmra.mrb[28].mxu0 %vm409_vm1, %v2319_v55 }
  0xb8   :  { %1642 = vmatprep.mubr.bf16.mxu0 %v2525_v0 }
 0x152   :  { %v468_v6 = vpop.f32.mrb[0].mxu0 }
 0x153   :  { %v559_v7 = vadd.f32 %v2768_v4, %v468_v6  ;;  %v470_v8 = vpop.f32.mrb[1].mxu0 }
 0x154   :  { %v560_v9 = vadd.f32 %v2771_v5, %v470_v8  ;;  %v472_v10 = vpop.f32.mrb[2].mxu0  ;;  %v2383_v8 = vld [vmem:[#allocation5 + $0x50] ss:$8 sps:$4 sm:$0xff]  }
 0x155   :  { %v561_v11 = vadd.f32 %v2768_v4, %v472_v10  ;;  %v474_v12 = vpop.f32.mrb[3].mxu0  ;;  %v591_v14 = vmax.f32 %v559_v7, 0.0 }
 0x156   :  { %v562_v13 = vadd.f32 %v2771_v5, %v474_v12  ;;  %v592_v16 = vmax.f32 %v560_v9, 0.0 }
 0x157   :  { %v593_v15 = vmax.f32 %v561_v11, 0.0  ;;  %v2388_v11 = vld [vmem:[#allocation5 + $0x64] ss:$8 sps:$4 sm:$0xff]  }
 0x158   :  { %v594_v17 = vmax.f32 %v562_v13, 0.0 }
 0x159   :  { %v623_v18 = vpack.c.bf16 %v593_v15, %v591_v14 }
 0x15a   :  { %v478_v19 = vpop.f32.mrb[4].mxu0  ;;  %v624_v20 = vpack.c.bf16 %v594_v17, %v592_v16  ;;  %v2386_v17 = vld [vmem:[#allocation5 + $0x60] ss:$8 sps:$4 sm:$0xff]  }
 0x15b   :  { %v563_v22 = vadd.f32 %v2768_v4, %v478_v19  ;;  %v480_v23 = vpop.f32.mrb[5].mxu0 }
 0x15c   :  { %v564_v25 = vadd.f32 %v2771_v5, %v480_v23  ;;  %v482_v26 = vpop.f32.mrb[6].mxu0  ;;  %875 = vmatprep.mubr.bf16.mxu1 %v624_v20  ;;  %v2391_v20 = vld [vmem:[#allocation5 + $0x74] ss:$8 sps:$4 sm:$0xff]  }
 0x15d   :  { %v565_v27 = vadd.f32 %v2768_v4, %v482_v26  ;;  %v484_v28 = vpop.f32.mrb[7].mxu0  ;;  %876 = vmatmul.mubr.bf16.vlgmr.msra.gmra.mrb[0].mxu1 %v623_v18  ;;  %v595_v31 = vmax.f32 %v563_v22, 0.0  ;;  %v2389_v26 = vld [vmem:[#allocation5 + $0x70] ss:$8 sps:$4 sm:$0xff]  }
 0x15e   :  { %v566_v29 = vadd.f32 %v2771_v5, %v484_v28  ;;  %1209 = vmatpush1.bf16.msra.mxu1 %v2368_v21  ;;  %v596_v34 = vmax.f32 %v564_v25, 0.0 }
 0x15f   :  { %v597_v32 = vmax.f32 %v565_v27, 0.0  ;;  %1210 = vmatprep.subr.bf16.mxu1 %v2373_v24 }
 0x160   :  { %v598_v35 = vmax.f32 %v566_v29, 0.0  ;;  %v2394_v29 = vld [vmem:[#allocation5 + $0x84] ss:$8 sps:$4 sm:$0xff]  }
 0x161   :  { %v625_v36 = vpack.c.bf16 %v597_v32, %v595_v31 }
 0x162   :  { %v626_v37 = vpack.c.bf16 %v598_v35, %v596_v34  ;;  %v488_v38 = vpop.f32.mrb[8].mxu0  ;;  %1211 = vmatpush1.bf16.msra.mxu1 %v2371_v30  ;;  %v2392_v35 = vld [vmem:[#allocation5 + $0x80] ss:$8 sps:$4 sm:$0xff]  }
 0x163   :  { %v567_v40 = vadd.f32 %v2768_v4, %v488_v38  ;;  %v490_v41 = vpop.f32.mrb[9].mxu0  ;;  %1212 = vmatprep.subr.bf16.mxu1 %v2376_v33  ;;  %v2397_v38 = vld [vmem:[#allocation5 + $0x94] ss:$8 sps:$4 sm:$0xff]  }
 0x164   :  { %v568_v43 = vadd.f32 %v2771_v5, %v490_v41  ;;  %v492_v44 = vpop.f32.mrb[10].mxu0  ;;  %885 = vmatprep.mubr.bf16.mxu1 %v626_v37 }
 0x165   :  { %v569_v45 = vadd.f32 %v2768_v4, %v492_v44  ;;  %v494_v46 = vpop.f32.mrb[11].mxu0  ;;  %886 = vmatmul.mubr.bf16.gmra.mrb[4].mxu1 %v625_v36  ;;  %v599_v49 = vmax.f32 %v567_v40, 0.0  ;;  %v2395_v44 = vld [vmem:[#allocation5 + $0x90] ss:$8 sps:$4 sm:$0xff]  }
 0x166   :  { %v570_v47 = vadd.f32 %v2771_v5, %v494_v46  ;;  %1213 = vmatpush1.bf16.msra.mxu1 %v2374_v39  ;;  %v600_v52 = vmax.f32 %v568_v43, 0.0 }
 0x167   :  { %v601_v50 = vmax.f32 %v569_v45, 0.0  ;;  %1214 = vmatprep.subr.bf16.mxu1 %v2379_v42 }
 0x168   :  { %v602_v53 = vmax.f32 %v570_v47, 0.0  ;;  %v2400_v47 = vld [vmem:[#allocation5 + $0xa4] ss:$8 sps:$4 sm:$0xff]  }
 0x169   :  { %v627_v54 = vpack.c.bf16 %v601_v50, %v599_v49 }
 0x16a   :  { %v628_v55 = vpack.c.bf16 %v602_v53, %v600_v52  ;;  %v498_v56 = vpop.f32.mrb[12].mxu0  ;;  %1215 = vmatpush1.bf16.msra.mxu1 %v2377_v48  ;;  %v2398_v53 = vld [vmem:[#allocation5 + $0xa0] ss:$8 sps:$4 sm:$0xff]  }
 0x16b   :  { %v571_v58 = vadd.f32 %v2768_v4, %v498_v56  ;;  %v500_v59 = vpop.f32.mrb[13].mxu0  ;;  %1216 = vmatprep.subr.bf16.mxu1 %v2382_v51  ;;  %v2403_v56 = vld [vmem:[#allocation5 + $0xb4] ss:$8 sps:$4 sm:$0xff]  }
 0x16c   :  { %v572_v61 = vadd.f32 %v2771_v5, %v500_v59  ;;  %v502_v62 = vpop.f32.mrb[14].mxu0  ;;  %895 = vmatprep.mubr.bf16.mxu1 %v628_v55 }
 0x16d   :  { %v573_v2 = vadd.f32 %v2768_v4, %v502_v62  ;;  %v504_v6 = vpop.f32.mrb[15].mxu0  ;;  %896 = vmatmul.mubr.bf16.gmra.mrb[8].mxu1 %v627_v54  ;;  %v603_v9 = vmax.f32 %v571_v58, 0.0  ;;  %v2401_v62 = vld [vmem:[#allocation5 + $0xb0] ss:$8 sps:$4 sm:$0xff]  }
 0x16e   :  { %v574_v7 = vadd.f32 %v2771_v5, %v504_v6  ;;  %1217 = vmatpush1.bf16.msra.mxu1 %v2380_v57  ;;  %v604_v12 = vmax.f32 %v572_v61, 0.0 }
 0x16f   :  { %v605_v10 = vmax.f32 %v573_v2, 0.0  ;;  %1218 = vmatprep.subr.bf16.mxu1 %v2385_v60 }
 0x170   :  { %v606_v13 = vmax.f32 %v574_v7, 0.0  ;;  %v2406_v7 = vld [vmem:[#allocation5 + $0xc4] ss:$8 sps:$4 sm:$0xff]  }
 0x171   :  { %v629_v14 = vpack.c.bf16 %v605_v10, %v603_v9 }
 0x172   :  { %v630_v15 = vpack.c.bf16 %v606_v13, %v604_v12  ;;  %v508_v16 = vpop.f32.mrb[16].mxu0  ;;  %1219 = vmatpush1.bf16.msra.mxu1 %v2383_v8  ;;  %v2404_v13 = vld [vmem:[#allocation5 + $0xc0] ss:$8 sps:$4 sm:$0xff]  }
 0x173   :  { %v575_v18 = vadd.f32 %v2768_v4, %v508_v16  ;;  %v510_v19 = vpop.f32.mrb[17].mxu0  ;;  %1220 = vmatprep.subr.bf16.mxu1 %v2388_v11  ;;  %v2409_v16 = vld [vmem:[#allocation5 + $0xd4] ss:$8 sps:$4 sm:$0xff]  }
 0x174   :  { %v576_v21 = vadd.f32 %v2771_v5, %v510_v19  ;;  %v512_v22 = vpop.f32.mrb[18].mxu0  ;;  %905 = vmatprep.mubr.bf16.mxu1 %v630_v15 }
 0x175   :  { %v577_v23 = vadd.f32 %v2768_v4, %v512_v22  ;;  %v514_v24 = vpop.f32.mrb[19].mxu0  ;;  %906 = vmatmul.mubr.bf16.gmra.mrb[12].mxu1 %v629_v14  ;;  %v607_v27 = vmax.f32 %v575_v18, 0.0  ;;  %v2407_v22 = vld [vmem:[#allocation5 + $0xd0] ss:$8 sps:$4 sm:$0xff]  }
 0x176   :  { %v578_v25 = vadd.f32 %v2771_v5, %v514_v24  ;;  %1221 = vmatpush1.bf16.msra.mxu1 %v2386_v17  ;;  %v608_v30 = vmax.f32 %v576_v21, 0.0 }
 0x177   :  { %v609_v28 = vmax.f32 %v577_v23, 0.0  ;;  %1222 = vmatprep.subr.bf16.mxu1 %v2391_v20 }
 0x178   :  { %v610_v31 = vmax.f32 %v578_v25, 0.0 }
 0x179   :  { %v631_v32 = vpack.c.bf16 %v609_v28, %v607_v27 }
 0x17a   :  { %v632_v33 = vpack.c.bf16 %v610_v31, %v608_v30  ;;  %v518_v34 = vpop.f32.mrb[20].mxu0  ;;  %1223 = vmatpush1.bf16.msra.mxu1 %v2389_v26  ;;  %v2410_v30 = vld [vmem:[#allocation5 + $0xe0] ss:$8 sps:$4 sm:$0xff]   ;;  %v2413_v31 = vld [vmem:[#allocation5 + $0xf0] ss:$8 sps:$4 sm:$0xff]  }
 0x17b   :  { %v579_v36 = vadd.f32 %v2768_v4, %v518_v34  ;;  %v520_v37 = vpop.f32.mrb[21].mxu0  ;;  %1224 = vmatprep.subr.bf16.mxu1 %v2394_v29  ;;  %v2412_v29 = vld [vmem:[#allocation5 + $0xe4] ss:$8 sps:$4 sm:$0xff]  }
 0x17c   :  { %v580_v39 = vadd.f32 %v2771_v5, %v520_v37  ;;  %v522_v40 = vpop.f32.mrb[22].mxu0  ;;  %915 = vmatprep.mubr.bf16.mxu1 %v632_v33  ;;  %v2421_v33 = vld [vmem:[#allocation7 + $0x1c] ss:$12 sps:$4 sm:$0xff]   ;;  %v2419_v34 = vld [vmem:[#allocation7 + $0x18] ss:$12 sps:$4 sm:$0xff]  }
 0x17d   :  { %v581_v41 = vadd.f32 %v2768_v4, %v522_v40  ;;  %v524_v42 = vpop.f32.mrb[23].mxu0  ;;  %916 = vmatmul.mubr.bf16.gmra.mrb[16].mxu1 %v631_v32  ;;  %v611_v45 = vmax.f32 %v579_v36, 0.0  ;;  %v2418_v32 = vld [vmem:[#allocation7 + $0x4] ss:$12 sps:$4 sm:$0xff]   ;;  %v2805_v36 = vld [vmem:[#allocation7 + $0x8] ss:$12 sps:$4 sm:$0xff]  }
 0x17e   :  { %v582_v43 = vadd.f32 %v2771_v5, %v524_v42  ;;  %1225 = vmatpush1.bf16.msra.mxu1 %v2392_v35  ;;  %v612_v48 = vmax.f32 %v580_v39, 0.0  ;;  %1610 = vmatprep.subr.bf16.mxu0 %v2418_v32  ;;  %v2424_v35 = vld [vmem:[#allocation7 + $0x34] ss:$12 sps:$4 sm:$0xff]   ;;  %v2422_v37 = vld [vmem:[#allocation7 + $0x30] ss:$12 sps:$4 sm:$0xff]  }
 0x17f   :  { %v613_v46 = vmax.f32 %v581_v41, 0.0  ;;  %1226 = vmatprep.subr.bf16.mxu1 %v2397_v38  ;;  %v2427_v38 = vld [vmem:[#allocation7 + $0x4c] ss:$12 sps:$4 sm:$0xff]   ;;  %v2425_v39 = vld [vmem:[#allocation7 + $0x48] ss:$12 sps:$4 sm:$0xff]  }
 0x180   :  { %v614_v49 = vmax.f32 %v582_v43, 0.0  ;;  %v2430_v40 = vld [vmem:[#allocation7 + $0x64] ss:$12 sps:$4 sm:$0xff]   ;;  %v2428_v41 = vld [vmem:[#allocation7 + $0x60] ss:$12 sps:$4 sm:$0xff]  }
 0x181   :  { %v633_v50 = vpack.c.bf16 %v613_v46, %v611_v45  ;;  %v2433_v42 = vld [vmem:[#allocation7 + $0x7c] ss:$12 sps:$4 sm:$0xff]   ;;  %v2431_v43 = vld [vmem:[#allocation7 + $0x78] ss:$12 sps:$4 sm:$0xff]   ;;  %v671_v46 = vld [vmem:[%s3430_s6] sm:$0x3] }
 0x182   :  { %v634_v51 = vpack.c.bf16 %v614_v49, %v612_v48  ;;  %v528_v52 = vpop.f32.mrb[24].mxu0  ;;  %1227 = vmatpush1.bf16.msra.mxu1 %v2395_v44  ;;  %v2437_v44 = vld [vmem:[#allocation7 + $0x94] ss:$12 sps:$4 sm:$0xff]   ;;  %v2435_v45 = vld [vmem:[#allocation7 + $0x90] ss:$12 sps:$4 sm:$0xff]   ;;  %v2815_v48 = vrot.slane %v671_v46, %v2765_v3 }
 0x183   :  { %v583_v54 = vadd.f32 %v2768_v4, %v528_v52  ;;  %v530_v55 = vpop.f32.mrb[25].mxu0  ;;  %1228 = vmatprep.subr.bf16.mxu1 %v2400_v47  ;;  %v2812_v47 = vrot.slane %v671_v46, %v2759_v1 }
 0x184   :  { %v584_v57 = vadd.f32 %v2771_v5, %v530_v55  ;;  %v532_v58 = vpop.f32.mrb[26].mxu0  ;;  %925 = vmatprep.mubr.bf16.mxu1 %v634_v51 }
 0x185   :  { %v585_v59 = vadd.f32 %v2768_v4, %v532_v58  ;;  %v534_v60 = vpop.f32.mrb[27].mxu0  ;;  %926 = vmatmul.mubr.bf16.gmra.mrb[20].mxu1 %v633_v50  ;;  %v615_v2 = vmax.f32 %v583_v54, 0.0 }
 0x186   :  { %v586_v61 = vadd.f32 %v2771_v5, %v534_v60  ;;  %1229 = vmatpush1.bf16.msra.mxu1 %v2398_v53  ;;  %v616_v8 = vmax.f32 %v584_v57, 0.0 }
 0x187   :  { %v617_v6 = vmax.f32 %v585_v59, 0.0  ;;  %1230 = vmatprep.subr.bf16.mxu1 %v2403_v56 }
 0x188   :  { %v618_v9 = vmax.f32 %v586_v61, 0.0 }
 0x189   :  { %v635_v10 = vpack.c.bf16 %v617_v6, %v615_v2 }
 0x18a   :  { %v636_v11 = vpack.c.bf16 %v618_v9, %v616_v8  ;;  %v538_v12 = vpop.f32.mrb[28].mxu0  ;;  %1231 = vmatpush1.bf16.msra.mxu1 %v2401_v62  ;;  %v2822_v8 = vld [vmem:[#allocation7 + $0x20] ss:$12 sps:$4 sm:$0xff]  }
 0x18b   :  { %v587_v14 = vadd.f32 %v2768_v4, %v538_v12  ;;  %v540_v15 = vpop.f32.mrb[29].mxu0  ;;  %1232 = vmatprep.subr.bf16.mxu1 %v2406_v7 }
 0x18c   :  { %v588_v17 = vadd.f32 %v2771_v5, %v540_v15  ;;  %v542_v18 = vpop.f32.mrb[30].mxu0  ;;  %935 = vmatprep.mubr.bf16.mxu1 %v636_v11 }
 0x18d   :  { %v589_v19 = vadd.f32 %v2768_v4, %v542_v18  ;;  %v544_v20 = vpop.f32.mrb[31].mxu0  ;;  %936 = vmatmul.mubr.bf16.gmra.mrb[24].mxu1 %v635_v10  ;;  %v619_v23 = vmax.f32 %v587_v14, 0.0  ;;  %v2415_v4 = vld [vmem:[#allocation5 + $0xf4] ss:$8 sps:$4 sm:$0xff]  }
 0x18e   :  { %v590_v21 = vadd.f32 %v2771_v5, %v544_v20  ;;  %1233 = vmatpush1.bf16.msra.mxu1 %v2404_v13  ;;  %v620_v25 = vmax.f32 %v588_v17, 0.0  ;;  %v2416_v5 = vld [vmem:[#allocation7] ss:$12 sps:$4 sm:$0xff]  }
 0x18f   :  { %v621_v24 = vmax.f32 %v589_v19, 0.0  ;;  %1234 = vmatprep.subr.bf16.mxu1 %v2409_v16  ;;  %1611 = vmatpush1.bf16.msra.mxu0 %v2416_v5 }
 0x190   :  { %v622_v26 = vmax.f32 %v590_v21, 0.0  ;;  %1612 = vmatprep.subr.bf16.mxu0 %v2421_v33 }
 0x191   :  { %v637_v27 = vpack.c.bf16 %v621_v24, %v619_v23 }
 0x192   :  { %v638_v28 = vpack.c.bf16 %v622_v26, %v620_v25  ;;  %1235 = vmatpush1.bf16.msra.mxu1 %v2407_v22 }
 0x193   :  { %1236 = vmatprep.subr.bf16.mxu1 %v2412_v29  ;;  %1613 = vmatpush1.bf16.msra.mxu0 %v2419_v34 }
 0x194   :  { %945 = vmatprep.mubr.bf16.mxu1 %v638_v28  ;;  %1614 = vmatprep.subr.bf16.mxu0 %v2424_v35 }
 0x195   :  { %946 = vmatmul.mubr.bf16.gmra.mrb[28].mxu1 %v637_v27 }
 0x196   :  { %1237 = vmatpush1.bf16.msra.mxu1 %v2410_v30 }
 0x197   :  { %1238 = vmatprep.subr.bf16.mxu1 %v2415_v4  ;;  %1615 = vmatpush1.bf16.msra.mxu0 %v2422_v37 }
 0x198   :  { %1616 = vmatprep.subr.bf16.mxu0 %v2427_v38 }
 0x19a   :  { %1239 = vmatpush1.bf16.msra.mxu1 %v2413_v31 }
 0x19b   :  { %2230 = vmatprep.subr.bf16.mxu1 %v2805_v36  ;;  %1617 = vmatpush1.bf16.msra.mxu0 %v2425_v39 }
 0x19c   :  { %1618 = vmatprep.subr.bf16.mxu0 %v2430_v40 }
 0x19f   :  { %1619 = vmatpush1.bf16.msra.mxu0 %v2428_v41 }
 0x1a0   :  { %1620 = vmatprep.subr.bf16.mxu0 %v2433_v42 }
 0x1a3   :  { %1621 = vmatpush1.bf16.msra.mxu0 %v2431_v43 }
 0x1a4   :  { %1622 = vmatprep.subr.bf16.mxu0 %v2437_v44 }
 0x1a7   :  { %1623 = vmatpush1.bf16.msra.mxu0 %v2435_v45 }
 0x230   :  { %v877_v49 = vpop.f32.mrb[0].mxu1 }
 0x231   :  { %v878_v50 = vadd.f32 %v877_v49, %v2812_v47  ;;  %v879_v51 = vpop.f32.mrb[1].mxu1 }
 0x232   :  { %v880_v52 = vadd.f32 %v879_v51, %v2815_v48  ;;  %v881_v53 = vpop.f32.mrb[2].mxu1 }
 0x233   :  { %v882_v54 = vadd.f32 %v881_v53, %v2812_v47  ;;  %v883_v55 = vpop.f32.mrb[3].mxu1  ;;  %v956_v57 = vmax.f32 %v878_v50, 0.0 }
 0x234   :  { %v884_v56 = vadd.f32 %v883_v55, %v2815_v48  ;;  %v957_v59 = vmax.f32 %v880_v52, 0.0 }
 0x235   :  { %v958_v58 = vmax.f32 %v882_v54, 0.0 }
 0x236   :  { %v959_v60 = vmax.f32 %v884_v56, 0.0 }
 0x237   :  { %v988_v61 = vpack.c.bf16 %v958_v58, %v956_v57 }
 0x238   :  { %v989_v62 = vpack.c.bf16 %v959_v60, %v957_v59  ;;  %v887_v2 = vpop.f32.mrb[4].mxu1 }
 0x239   :  { %v888_v6 = vadd.f32 %v887_v2, %v2812_v47  ;;  %v889_v7 = vpop.f32.mrb[5].mxu1 }
 0x23a   :  { %v890_v9 = vadd.f32 %v889_v7, %v2815_v48  ;;  %v891_v10 = vpop.f32.mrb[6].mxu1  ;;  %1240 = vmatprep.mubr.bf16.mxu1 %v989_v62 }
 0x23b   :  { %v892_v11 = vadd.f32 %v891_v10, %v2812_v47  ;;  %v893_v12 = vpop.f32.mrb[7].mxu1  ;;  %1241 = vmatmul.mubr.bf16.vlgmr.msra.gmra.mrb[32].mxu1 %v988_v61  ;;  %v960_v14 = vmax.f32 %v888_v6, 0.0 }
 0x23c   :  { %v894_v13 = vadd.f32 %v893_v12, %v2815_v48  ;;  %2238 = vmatpush3.bf16.msra.mxu1 %v2805_v36  ;;  %v961_v16 = vmax.f32 %v890_v9, 0.0 }
 0x23d   :  { %v962_v15 = vmax.f32 %v892_v11, 0.0  ;;  %2231 = vmatprep.subr.bf16.mxu1 %v2822_v8 }
 0x23e   :  { %v963_v17 = vmax.f32 %v894_v13, 0.0 }
 0x23f   :  { %v990_v18 = vpack.c.bf16 %v962_v15, %v960_v14 }
 0x240   :  { %v991_v19 = vpack.c.bf16 %v963_v17, %v961_v16  ;;  %v897_v20 = vpop.f32.mrb[8].mxu1  ;;  %2239 = vmatpush3.bf16.msra.mxu1 %v2822_v8 }
 0x241   :  { %v898_v21 = vadd.f32 %v897_v20, %v2812_v47  ;;  %v899_v22 = vpop.f32.mrb[9].mxu1 }
 0x242   :  { %v900_v23 = vadd.f32 %v899_v22, %v2815_v48  ;;  %v901_v24 = vpop.f32.mrb[10].mxu1  ;;  %1250 = vmatprep.mubr.bf16.mxu1 %v991_v19 }
 0x243   :  { %v902_v25 = vadd.f32 %v901_v24, %v2812_v47  ;;  %v903_v26 = vpop.f32.mrb[11].mxu1  ;;  %1251 = vmatmul.mubr.bf16.gmra.mrb[36].mxu1 %v990_v18  ;;  %v964_v28 = vmax.f32 %v898_v21, 0.0 }
 0x244   :  { %v904_v27 = vadd.f32 %v903_v26, %v2815_v48  ;;  %v965_v30 = vmax.f32 %v900_v23, 0.0 }
 0x245   :  { %v966_v29 = vmax.f32 %v902_v25, 0.0 }
 0x246   :  { %v967_v4 = vmax.f32 %v904_v27, 0.0 }
 0x247   :  { %v992_v31 = vpack.c.bf16 %v966_v29, %v964_v28 }
 0x248   :  { %v993_v5 = vpack.c.bf16 %v967_v4, %v965_v30  ;;  %v907_v32 = vpop.f32.mrb[12].mxu1 }
 0x249   :  { %v908_v33 = vadd.f32 %v907_v32, %v2812_v47  ;;  %v909_v34 = vpop.f32.mrb[13].mxu1 }
 0x24a   :  { %v910_v35 = vadd.f32 %v909_v34, %v2815_v48  ;;  %v911_v37 = vpop.f32.mrb[14].mxu1  ;;  %1260 = vmatprep.mubr.bf16.mxu1 %v993_v5 }
 0x24b   :  { %v912_v38 = vadd.f32 %v911_v37, %v2812_v47  ;;  %v913_v39 = vpop.f32.mrb[15].mxu1  ;;  %1261 = vmatmul.mubr.bf16.gmra.mrb[40].mxu1 %v992_v31  ;;  %v968_v41 = vmax.f32 %v908_v33, 0.0 }
 0x24c   :  { %v914_v40 = vadd.f32 %v913_v39, %v2815_v48  ;;  %v969_v43 = vmax.f32 %v910_v35, 0.0 }
 0x24d   :  { %v970_v42 = vmax.f32 %v912_v38, 0.0 }
 0x24e   :  { %v971_v44 = vmax.f32 %v914_v40, 0.0 }
 0x24f   :  { %v994_v45 = vpack.c.bf16 %v970_v42, %v968_v41 }
 0x250   :  { %v995_v46 = vpack.c.bf16 %v971_v44, %v969_v43  ;;  %v917_v49 = vpop.f32.mrb[16].mxu1 }
 0x251   :  { %v918_v50 = vadd.f32 %v917_v49, %v2812_v47  ;;  %v919_v51 = vpop.f32.mrb[17].mxu1  ;;  %v2441_v49 = vld [vmem:[#allocation7 + $0xac] ss:$12 sps:$4 sm:$0xff]  }
 0x252   :  { %v920_v52 = vadd.f32 %v919_v51, %v2815_v48  ;;  %v921_v53 = vpop.f32.mrb[18].mxu1  ;;  %1270 = vmatprep.mubr.bf16.mxu1 %v995_v46  ;;  %1624 = vmatprep.subr.bf16.mxu0 %v2441_v49  ;;  %v2854_v51 = vld [vmem:[#allocation7 + $0x38] ss:$12 sps:$4 sm:$0xff]  }
 0x253   :  { %v922_v54 = vadd.f32 %v921_v53, %v2812_v47  ;;  %v923_v55 = vpop.f32.mrb[19].mxu1  ;;  %1271 = vmatmul.mubr.bf16.gmra.mrb[44].mxu1 %v994_v45  ;;  %v972_v57 = vmax.f32 %v918_v50, 0.0  ;;  %v2439_v50 = vld [vmem:[#allocation7 + $0xa8] ss:$12 sps:$4 sm:$0xff]   ;;  %2232 = vmatprep.subr.bf16.mxu1 %v2854_v51  ;;  %v2871_v53 = vld [vmem:[#allocation7 + $0x98] ss:$12 sps:$4 sm:$0xff]  }
 0x254   :  { %v924_v56 = vadd.f32 %v923_v55, %v2815_v48  ;;  %v973_v59 = vmax.f32 %v920_v52, 0.0  ;;  %1625 = vmatpush1.bf16.msra.mxu0 %v2439_v50  ;;  %2240 = vmatpush3.bf16.msra.mxu1 %v2854_v51  ;;  %v2867_v52 = vld [vmem:[#allocation7 + $0x80] ss:$12 sps:$4 sm:$0xff]  }
 0x255   :  { %v974_v58 = vmax.f32 %v922_v54, 0.0  ;;  %2198 = vmatprep.subr.bf16.mxu0 %v2805_v36  ;;  %v2875_v54 = vld [vmem:[#allocation7 + $0xb0] ss:$12 sps:$4 sm:$0xff]   ;;  %v1036_v55 = vld [vmem:[%s3432_s8] sm:$0x3] }
 0x256   :  { %v975_v60 = vmax.f32 %v924_v56, 0.0  ;;  %v1353_v56 = vld [vmem:[%s3433_s9] sm:$0x1] }
 0x257   :  { %v996_v61 = vpack.c.bf16 %v974_v58, %v972_v57  ;;  %v2886_v57 = vrot.slane %v1036_v55, %v2759_v1  ;;  %v1354_v58 = vunpack.c.l.bf16 %v1353_v56 }
 0x258   :  { %v997_v62 = vpack.c.bf16 %v975_v60, %v973_v59  ;;  %v927_v2 = vpop.f32.mrb[20].mxu1  ;;  %v2889_v59 = vrot.slane %v1036_v55, %v2765_v3 }
 0x259   :  { %v928_v6 = vadd.f32 %v927_v2, %v2812_v47  ;;  %v929_v7 = vpop.f32.mrb[21].mxu1  ;;  %v2893_v2 = vrot.slane %v1354_v58, %v2759_v1 }
 0x25a   :  { %v930_v9 = vadd.f32 %v929_v7, %v2815_v48  ;;  %v931_v10 = vpop.f32.mrb[22].mxu1  ;;  %1280 = vmatprep.mubr.bf16.mxu1 %v997_v62 }
 0x25b   :  { %v932_v11 = vadd.f32 %v931_v10, %v2812_v47  ;;  %v933_v12 = vpop.f32.mrb[23].mxu1  ;;  %1281 = vmatmul.mubr.bf16.gmra.mrb[48].mxu1 %v996_v61  ;;  %v976_v14 = vmax.f32 %v928_v6, 0.0 }
 0x25c   :  { %v934_v13 = vadd.f32 %v933_v12, %v2815_v48  ;;  %v977_v16 = vmax.f32 %v930_v9, 0.0 }
 0x25d   :  { %v978_v15 = vmax.f32 %v932_v11, 0.0 }
 0x25e   :  { %v979_v17 = vmax.f32 %v934_v13, 0.0 }
 0x25f   :  { %v998_v18 = vpack.c.bf16 %v978_v15, %v976_v14 }
 0x260   :  { %v999_v19 = vpack.c.bf16 %v979_v17, %v977_v16  ;;  %v937_v20 = vpop.f32.mrb[24].mxu1 }
 0x261   :  { %v938_v21 = vadd.f32 %v937_v20, %v2812_v47  ;;  %v939_v22 = vpop.f32.mrb[25].mxu1 }
 0x262   :  { %v940_v23 = vadd.f32 %v939_v22, %v2815_v48  ;;  %v941_v24 = vpop.f32.mrb[26].mxu1  ;;  %1290 = vmatprep.mubr.bf16.mxu1 %v999_v19 }
 0x263   :  { %v942_v25 = vadd.f32 %v941_v24, %v2812_v47  ;;  %v943_v26 = vpop.f32.mrb[27].mxu1  ;;  %1291 = vmatmul.mubr.bf16.gmra.mrb[52].mxu1 %v998_v18  ;;  %v980_v28 = vmax.f32 %v938_v21, 0.0 }
 0x264   :  { %v944_v27 = vadd.f32 %v943_v26, %v2815_v48  ;;  %v981_v30 = vmax.f32 %v940_v23, 0.0 }
 0x265   :  { %v982_v29 = vmax.f32 %v942_v25, 0.0 }
 0x266   :  { %v983_v4 = vmax.f32 %v944_v27, 0.0 }
 0x267   :  { %v1000_v31 = vpack.c.bf16 %v982_v29, %v980_v28 }
 0x268   :  { %v1001_v5 = vpack.c.bf16 %v983_v4, %v981_v30  ;;  %v947_v32 = vpop.f32.mrb[28].mxu1 }
 0x269   :  { %v948_v33 = vadd.f32 %v947_v32, %v2812_v47  ;;  %v949_v34 = vpop.f32.mrb[29].mxu1 }
 0x26a   :  { %v950_v35 = vadd.f32 %v949_v34, %v2815_v48  ;;  %v951_v37 = vpop.f32.mrb[30].mxu1  ;;  %1300 = vmatprep.mubr.bf16.mxu1 %v1001_v5 }
 0x26b   :  { %v952_v38 = vadd.f32 %v951_v37, %v2812_v47  ;;  %v953_v39 = vpop.f32.mrb[31].mxu1  ;;  %1301 = vmatmul.mubr.bf16.gmra.mrb[56].mxu1 %v1000_v31  ;;  %v984_v41 = vmax.f32 %v948_v33, 0.0  ;;  %v2859_v47 = vld [vmem:[#allocation7 + $0x50] ss:$12 sps:$4 sm:$0xff]  }
 0x26c   :  { %v954_v40 = vadd.f32 %v953_v39, %v2815_v48  ;;  %v985_v43 = vmax.f32 %v950_v35, 0.0  ;;  %2233 = vmatprep.subr.bf16.mxu1 %v2859_v47  ;;  %v2863_v48 = vld [vmem:[#allocation7 + $0x68] ss:$12 sps:$4 sm:$0xff]  }
 0x26d   :  { %v986_v42 = vmax.f32 %v952_v38, 0.0  ;;  %2241 = vmatpush3.bf16.msra.mxu1 %v2859_v47 }
 0x26e   :  { %v987_v44 = vmax.f32 %v954_v40, 0.0  ;;  %2234 = vmatprep.subr.bf16.mxu1 %v2863_v48 }
 0x26f   :  { %v1002_v45 = vpack.c.bf16 %v986_v42, %v984_v41 }
 0x270   :  { %v1003_v46 = vpack.c.bf16 %v987_v44, %v985_v43 }
 0x271   :  { %2242 = vmatpush3.bf16.msra.mxu1 %v2863_v48 }
 0x272   :  { %1310 = vmatprep.mubr.bf16.mxu1 %v1003_v46  ;;  %2235 = vmatprep.subr.bf16.mxu1 %v2867_v52 }
 0x273   :  { %1311 = vmatmul.mubr.bf16.gmra.mrb[60].mxu1 %v1002_v45 }
 0x275   :  { %2243 = vmatpush3.bf16.msra.mxu1 %v2867_v52 }
 0x276   :  { %2236 = vmatprep.subr.bf16.mxu1 %v2871_v53 }
 0x279   :  { %2244 = vmatpush3.bf16.msra.mxu1 %v2871_v53 }
 0x27a   :  { %2237 = vmatprep.subr.bf16.mxu1 %v2875_v54 }
 0x27d   :  { %2245 = vmatpush3.bf16.msra.mxu1 %v2875_v54 }
 0x30e   :  { %v1242_v60 = vpop.f32.mrb[32].mxu1 }
 0x30f   :  { %v1243_v61 = vadd.f32 %v1242_v60, %v2886_v57  ;;  %v1244_v62 = vpop.f32.mrb[33].mxu1 }
 0x310   :  { %v1245_v6 = vadd.f32 %v1244_v62, %v2889_v59  ;;  %v1246_v7 = vpop.f32.mrb[34].mxu1 }
 0x311   :  { %v1321_v9 = vmax.f32 %v1243_v61, 0.0  ;;  %v1247_v10 = vadd.f32 %v1246_v7, %v2886_v57  ;;  %v1248_v11 = vpop.f32.mrb[35].mxu1 }
 0x312   :  { %v1249_v12 = vadd.f32 %v1248_v11, %v2889_v59  ;;  %v1322_v15 = vmax.f32 %v1245_v6, 0.0 }
 0x313   :  { %v1323_v13 = vmax.f32 %v1247_v10, 0.0  ;;  %v1359_v14 = vmul.f32 %v2893_v2, %v1321_v9 }
 0x314   :  { %v1324_v16 = vmax.f32 %v1249_v12, 0.0 }
 0x315   :  { %1375 = vadd.xlane.f32.xlu0 %v1359_v14  ;;  %v1360_v21 = vmul.f32 %v2893_v2, %v1323_v13 }
 0x316   :  { %v2899_v17 = vpack.c.bf16 %v1324_v16, %v1322_v15  ;;  %v1252_v18 = vpop.f32.mrb[36].mxu1 }
 0x317   :  { %v1253_v19 = vadd.f32 %v1252_v18, %v2886_v57  ;;  %v1254_v20 = vpop.f32.mrb[37].mxu1 }
 0x318   :  { %v1255_v22 = vadd.f32 %v1254_v20, %v2889_v59  ;;  %v1256_v23 = vpop.f32.mrb[38].mxu1  ;;  %1643 = vmatmul.mubr.bf16.vlgmr.msra.gmra.mrb[32].mxu0 %v2899_v17 }
 0x319   :  { %v1325_v24 = vmax.f32 %v1253_v19, 0.0  ;;  %v1257_v25 = vadd.f32 %v1256_v23, %v2886_v57  ;;  %v1258_v26 = vpop.f32.mrb[39].mxu1  ;;  %2199 = vmatpush3.bf16.msra.mxu0 %v2805_v36  ;;  %1377 = vadd.xlane.f32.xlu0 %v1360_v21 }
 0x31a   :  { %v1259_v27 = vadd.f32 %v1258_v26, %v2889_v59  ;;  %1652 = vmatprep.mubr.bf16.mxu0 %v2525_v0  ;;  %2200 = vmatprep.subr.bf16.mxu0 %v2822_v8  ;;  %v1326_v30 = vmax.f32 %v1255_v22, 0.0 }
 0x31b   :  { %v1327_v28 = vmax.f32 %v1257_v25, 0.0  ;;  %v1361_v29 = vmul.f32 %v2893_v2, %v1325_v24 }
 0x31c   :  { %v1328_v4 = vmax.f32 %v1259_v27, 0.0 }
 0x31d   :  { %1379 = vadd.xlane.f32.xlu1 %v1361_v29  ;;  %2201 = vmatpush3.bf16.msra.mxu0 %v2822_v8  ;;  %v1362_v33 = vmul.f32 %v2893_v2, %v1327_v28 }
 0x31e   :  { %v2912_v31 = vpack.c.bf16 %v1328_v4, %v1326_v30  ;;  %v1262_v5 = vpop.f32.mrb[40].mxu1  ;;  %2202 = vmatprep.subr.bf16.mxu0 %v2854_v51 }
 0x31f   :  { %v1263_v36 = vadd.f32 %v1262_v5, %v2886_v57  ;;  %v1264_v32 = vpop.f32.mrb[41].mxu1 }
 0x320   :  { %v1265_v34 = vadd.f32 %v1264_v32, %v2889_v59  ;;  %v1266_v35 = vpop.f32.mrb[42].mxu1  ;;  %1653 = vmatmul.mubr.bf16.gmra.mrb[36].mxu0 %v2912_v31 }
 0x321   :  { %v1329_v37 = vmax.f32 %v1263_v36, 0.0  ;;  %v1267_v38 = vadd.f32 %v1266_v35, %v2886_v57  ;;  %v1268_v39 = vpop.f32.mrb[43].mxu1  ;;  %1381 = vadd.xlane.f32.xlu1 %v1362_v33  ;;  %1662 = vmatprep.mubr.bf16.mxu0 %v2525_v0 }
 0x322   :  { %v1269_v8 = vadd.f32 %v1268_v39, %v2889_v59  ;;  %2203 = vmatpush3.bf16.msra.mxu0 %v2854_v51  ;;  %v1330_v42 = vmax.f32 %v1265_v34, 0.0 }
 0x323   :  { %v1331_v40 = vmax.f32 %v1267_v38, 0.0  ;;  %v1363_v41 = vmul.f32 %v2893_v2, %v1329_v37  ;;  %2204 = vmatprep.subr.bf16.mxu0 %v2859_v47 }
 0x324   :  { %v1332_v43 = vmax.f32 %v1269_v8, 0.0 }
 0x325   :  { %1383 = vadd.xlane.f32.xlu0 %v1363_v41  ;;  %v1364_v44 = vmul.f32 %v2893_v2, %v1331_v40 }
 0x326   :  { %v1427_v45 = vpack.c.bf16 %v1332_v43, %v1330_v42  ;;  %v1272_v46 = vpop.f32.mrb[44].mxu1  ;;  %2205 = vmatpush3.bf16.msra.mxu0 %v2859_v47 }
 0x327   :  { %v1273_v49 = vadd.f32 %v1272_v46, %v2886_v57  ;;  %v1274_v50 = vpop.f32.mrb[45].mxu1  ;;  %1385 = vadd.xlane.f32.xlu1 %v1364_v44  ;;  %2206 = vmatprep.subr.bf16.mxu0 %v2863_v48 }
 0x328   :  { %v1275_v51 = vadd.f32 %v1274_v50, %v2889_v59  ;;  %v1276_v55 = vpop.f32.mrb[46].mxu1  ;;  %1663 = vmatmul.mubr.bf16.gmra.mrb[40].mxu0 %v1427_v45  ;;  %2218 = vmatprep.mubr.bf16.mxu1 %v1427_v45 }
 0x329   :  { %v1333_v56 = vmax.f32 %v1273_v49, 0.0  ;;  %v1277_v58 = vadd.f32 %v1276_v55, %v2886_v57  ;;  %v1278_v60 = vpop.f32.mrb[47].mxu1  ;;  %1672 = vmatprep.mubr.bf16.mxu0 %v2525_v0 }
 0x32a   :  { %v1279_v61 = vadd.f32 %v1278_v60, %v2889_v59  ;;  %2207 = vmatpush3.bf16.msra.mxu0 %v2863_v48  ;;  %v1334_v6 = vmax.f32 %v1275_v51, 0.0 }
 0x32b   :  { %v1335_v47 = vmax.f32 %v1277_v58, 0.0  ;;  %v1365_v62 = vmul.f32 %v2893_v2, %v1333_v56  ;;  %2208 = vmatprep.subr.bf16.mxu0 %v2867_v52 }
 0x32c   :  { %v1336_v7 = vmax.f32 %v1279_v61, 0.0 }
 0x32d   :  { %1387 = vadd.xlane.f32.xlu0 %v1365_v62  ;;  %v1366_v9 = vmul.f32 %v2893_v2, %v1335_v47 }
 0x32e   :  { %v1428_v10 = vpack.c.bf16 %v1336_v7, %v1334_v6  ;;  %v1282_v11 = vpop.f32.mrb[48].mxu1  ;;  %2209 = vmatpush3.bf16.msra.mxu0 %v2867_v52 }
 0x32f   :  { %v1283_v12 = vadd.f32 %v1282_v11, %v2886_v57  ;;  %v1284_v13 = vpop.f32.mrb[49].mxu1  ;;  %1389 = vadd.xlane.f32.xlu1 %v1366_v9  ;;  %2210 = vmatprep.subr.bf16.mxu0 %v2871_v53 }
 0x330   :  { %v1285_v48 = vadd.f32 %v1284_v13, %v2889_v59  ;;  %v1286_v14 = vpop.f32.mrb[50].mxu1  ;;  %1673 = vmatmul.mubr.bf16.gmra.mrb[44].mxu0 %v1428_v10  ;;  %2219 = vmatmul.mubr.bf16.vlgmr.msra.gmra.mrb[64].mxu1 %v1428_v10 }
 0x331   :  { %v1337_v15 = vmax.f32 %v1283_v12, 0.0  ;;  %v1287_v16 = vadd.f32 %v1286_v14, %v2886_v57  ;;  %v1288_v18 = vpop.f32.mrb[51].mxu1  ;;  %1682 = vmatprep.mubr.bf16.mxu0 %v2525_v0 }
 0x332   :  { %v1289_v19 = vadd.f32 %v1288_v18, %v2889_v59  ;;  %2211 = vmatpush3.bf16.msra.mxu0 %v2871_v53  ;;  %v1338_v21 = vmax.f32 %v1285_v48, 0.0 }
 0x333   :  { %v1339_v52 = vmax.f32 %v1287_v16, 0.0  ;;  %v1367_v20 = vmul.f32 %v2893_v2, %v1337_v15  ;;  %2212 = vmatprep.subr.bf16.mxu0 %v2875_v54 }
 0x334   :  { %v1340_v22 = vmax.f32 %v1289_v19, 0.0 }
 0x335   :  { %1391 = vadd.xlane.f32.xlu0 %v1367_v20  ;;  %v1368_v23 = vmul.f32 %v2893_v2, %v1339_v52 }
 0x336   :  { %v1429_v24 = vpack.c.bf16 %v1340_v22, %v1338_v21  ;;  %v1292_v25 = vpop.f32.mrb[52].mxu1  ;;  %2213 = vmatpush3.bf16.msra.mxu0 %v2875_v54 }
 0x337   :  { %v1293_v26 = vadd.f32 %v1292_v25, %v2886_v57  ;;  %v1294_v27 = vpop.f32.mrb[53].mxu1  ;;  %1393 = vadd.xlane.f32.xlu1 %v1368_v23 }
 0x338   :  { %v1295_v53 = vadd.f32 %v1294_v27, %v2889_v59  ;;  %v1296_v28 = vpop.f32.mrb[54].mxu1  ;;  %1683 = vmatmul.mubr.bf16.gmra.mrb[48].mxu0 %v1429_v24  ;;  %2222 = vmatprep.mubr.bf16.mxu1 %v1429_v24 }
 0x339   :  { %v1341_v29 = vmax.f32 %v1293_v26, 0.0  ;;  %v1297_v30 = vadd.f32 %v1296_v28, %v2886_v57  ;;  %v1298_v4 = vpop.f32.mrb[55].mxu1  ;;  %1692 = vmatprep.mubr.bf16.mxu0 %v2525_v0 }
 0x33a   :  { %v1299_v5 = vadd.f32 %v1298_v4, %v2889_v59  ;;  %v1342_v32 = vmax.f32 %v1295_v53, 0.0 }
 0x33b   :  { %v1343_v36 = vmax.f32 %v1297_v30, 0.0  ;;  %v1369_v54 = vmul.f32 %v2893_v2, %v1341_v29 }
 0x33c   :  { %v1344_v33 = vmax.f32 %v1299_v5, 0.0 }
 0x33d   :  { %1395 = vadd.xlane.f32.xlu0 %v1369_v54  ;;  %v1370_v34 = vmul.f32 %v2893_v2, %v1343_v36 }
 0x33e   :  { %v1430_v35 = vpack.c.bf16 %v1344_v33, %v1342_v32  ;;  %v1302_v37 = vpop.f32.mrb[56].mxu1 }
 0x33f   :  { %v1303_v38 = vadd.f32 %v1302_v37, %v2886_v57  ;;  %v1304_v39 = vpop.f32.mrb[57].mxu1  ;;  %1397 = vadd.xlane.f32.xlu1 %v1370_v34 }
 0x340   :  { %v1305_v8 = vadd.f32 %v1304_v39, %v2889_v59  ;;  %v1306_v40 = vpop.f32.mrb[58].mxu1  ;;  %1693 = vmatmul.mubr.bf16.gmra.mrb[52].mxu0 %v1430_v35  ;;  %2223 = vmatmul.mubr.bf16.gmra.mrb[68].mxu1 %v1430_v35 }
 0x341   :  { %v1345_v41 = vmax.f32 %v1303_v38, 0.0  ;;  %v1307_v42 = vadd.f32 %v1306_v40, %v2886_v57  ;;  %v1308_v43 = vpop.f32.mrb[59].mxu1  ;;  %1702 = vmatprep.mubr.bf16.mxu0 %v2525_v0 }
 0x342   :  { %v1309_v44 = vadd.f32 %v1308_v43, %v2889_v59  ;;  %v1346_v49 = vmax.f32 %v1305_v8, 0.0 }
 0x343   :  { %v1347_v45 = vmax.f32 %v1307_v42, 0.0  ;;  %v1371_v46 = vmul.f32 %v2893_v2, %v1345_v41 }
 0x344   :  { %v1348_v50 = vmax.f32 %v1309_v44, 0.0 }
 0x345   :  { %1399 = vadd.xlane.f32.xlu0 %v1371_v46  ;;  %v1372_v51 = vmul.f32 %v2893_v2, %v1347_v45 }
 0x346   :  { %v1431_v55 = vpack.c.bf16 %v1348_v50, %v1346_v49  ;;  %v1312_v56 = vpop.f32.mrb[60].mxu1  ;;  %v1477_v50 = vsub.s32 2, %v2756_v63 }
 0x347   :  { %v1313_v58 = vadd.f32 %v1312_v56, %v2886_v57  ;;  %1401 = vadd.xlane.f32.xlu1 %v1372_v51  ;;  %v1314_v60 = vpop.f32.mrb[61].mxu1 }
 0x348   :  { %v1315_v61 = vadd.f32 %v1314_v60, %v2889_v59  ;;  %v1316_v47 = vpop.f32.mrb[62].mxu1  ;;  %1703 = vmatmul.mubr.bf16.gmra.mrb[56].mxu0 %v1431_v55  ;;  %2226 = vmatprep.mubr.bf16.mxu1 %v1431_v55 }
 0x349   :  { %v1349_v62 = vmax.f32 %v1313_v58, 0.0  ;;  %v1317_v6 = vadd.f32 %v1316_v47, %v2886_v57  ;;  %v1318_v7 = vpop.f32.mrb[63].mxu1  ;;  %1712 = vmatprep.mubr.bf16.mxu0 %v2525_v0  ;;  %v1465_v0 = vld [vmem:[%s3436_s12] sm:$0x7] }
 0x34a   :  { %v1319_v9 = vadd.f32 %v1318_v7, %v2889_v59  ;;  %v1350_v12 = vmax.f32 %v1315_v61, 0.0  ;;  %v2976_v59 = vrot.slane %v1465_v0, %v2759_v1  ;;  %v2984_v15 = vrot.slane %v1465_v0, %v2765_v3 }
 0x34b   :  { %v1351_v10 = vmax.f32 %v1317_v6, 0.0  ;;  %v1373_v11 = vmul.f32 %v2893_v2, %v1349_v62  ;;  %v3055_v61 = vrot.slane %v1465_v0, %v1477_v50 }
 0x34c   :  { %v1352_v13 = vmax.f32 %v1319_v9, 0.0 }
 0x34d   :  { %1403 = vadd.xlane.f32.xlu0 %v1373_v11  ;;  %v1374_v48 = vmul.f32 %v2893_v2, %v1351_v10  ;;  %v2981_v2 = vstv %s3434_s10 }
 0x34e   :  { %v1432_v14 = vpack.c.bf16 %v1352_v13, %v1350_v12 }
 0x34f   :  { %1405 = vadd.xlane.f32.xlu1 %v1374_v48 }
 0x350   :  { %1713 = vmatmul.mubr.bf16.gmra.mrb[60].mxu0 %v1432_v14  ;;  %2227 = vmatmul.mubr.bf16.gmra.mrb[72].mxu1 %v1432_v14 }
 0x351   :  { %2214 = vmatprep.mubr.bf16.mxu0 %v2899_v17 }
 0x358   :  { %2215 = vmatmul.mubr.bf16.vlgmr.msra.gmra.mrb[64].mxu0 %v2912_v31 }
 0x3a2   :  { %v1376_v57 = vpop.xlane.xlu0 %1375 }
 0x3a3   :  { %v2987_v31 = vadd.f32 %v2981_v2, %v1376_v57 }
 0x3a6   :  { %v1378_v16 = vpop.xlane.xlu0 %1377 }
 0x3a7   :  { %v2992_v21 = vadd.f32 %v2981_v2, %v1378_v16 }
 0x3aa   :  { %v1380_v52 = vpop.xlane.xlu1 %1379 }
 0x3ab   :  { %v3013_v4 = vadd.f32 %v2981_v2, %v1380_v52 }
 0x3ae   :  { %v1382_v29 = vpop.xlane.xlu1 %1381 }
 0x3af   :  { %v3018_v33 = vadd.f32 %v2981_v2, %v1382_v29 }
 0x3eb   :  { %v1644_v17 = vpop.f32.mrb[32].mxu0 }
 0x3ec   :  { %v1645_v18 = vadd.f32 %v1644_v17, %v2976_v59  ;;  %v1646_v19 = vpop.f32.mrb[33].mxu0 }
 0x3ed   :  { %v1647_v1 = vadd.f32 %v1646_v19, %v2984_v15  ;;  %v1648_v20 = vpop.f32.mrb[34].mxu0 }
 0x3ee   :  { %v2995_v22 = vadd.f32 %v1645_v18, %v2987_v31  ;;  %v1649_v3 = vadd.f32 %v1648_v20, %v2976_v59  ;;  %v1650_v23 = vpop.f32.mrb[35].mxu0 }
 0x3ef   :  { %v2998_v24 = vadd.f32 %v1647_v1, %v1645_v18  ;;  %v3001_v25 = vadd.f32 %v1647_v1, %v2987_v31  ;;  %v1651_v26 = vadd.f32 %v1650_v23, %v2984_v15 }
 0x3f0   :  { %v3005_v27 = vadd.f32 %v1649_v3, %v2992_v21 }
 0x3f1   :  { %v3007_v53 = vadd.f32 %v1651_v26, %v1649_v3  ;;  %v3010_v28 = vadd.f32 %v1651_v26, %v2992_v21 }
 0x3f2   :  { %3444 = vst [vmem:[#allocation10_spill] sm:$0xff] %v3005_v27 }
 0x3f3   :  { %3445 = vst [vmem:[#allocation11_spill] sm:$0xff] %v3010_v28  ;;  %v1654_v30 = vpop.f32.mrb[36].mxu0 }
 0x3f4   :  { %v1655_v5 = vadd.f32 %v1654_v30, %v2976_v59  ;;  %v1656_v36 = vpop.f32.mrb[37].mxu0 }
 0x3f5   :  { %v1657_v54 = vadd.f32 %v1656_v36, %v2984_v15  ;;  %v1658_v32 = vpop.f32.mrb[38].mxu0 }
 0x3f6   :  { %v3021_v34 = vadd.f32 %v1655_v5, %v3013_v4  ;;  %v1659_v35 = vadd.f32 %v1658_v32, %v2976_v59  ;;  %v1660_v37 = vpop.f32.mrb[39].mxu0 }
 0x3f7   :  { %v3024_v38 = vadd.f32 %v1657_v54, %v1655_v5  ;;  %v3027_v39 = vadd.f32 %v1657_v54, %v3013_v4  ;;  %v1661_v8 = vadd.f32 %v1660_v37, %v2984_v15 }
 0x3f8   :  { %v3031_v40 = vadd.f32 %v1659_v35, %v3018_v33 }
 0x3f9   :  { %v3033_v41 = vadd.f32 %v1661_v8, %v1659_v35  ;;  %v3036_v42 = vadd.f32 %v1661_v8, %v3018_v33 }
 0x3fb   :  { %v1664_v43 = vpop.f32.mrb[40].mxu0 }
 0x3fc   :  { %v3039_v44 = vadd.f32 %v1664_v43, %v2976_v59  ;;  %v1666_v45 = vpop.f32.mrb[41].mxu0 }
 0x3fd   :  { %v3042_v46 = vadd.f32 %v1666_v45, %v2984_v15  ;;  %v1668_v49 = vpop.f32.mrb[42].mxu0 }
 0x3fe   :  { %v3046_v51 = vadd.f32 %v1668_v49, %v2976_v59  ;;  %v1670_v55 = vpop.f32.mrb[43].mxu0 }
 0x3ff   :  { %v1836_v56 = vadd.f32 %v3042_v46, %v3039_v44  ;;  %v3051_v58 = vadd.f32 %v1670_v55, %v2984_v15 }
 0x401   :  { %v1840_v60 = vadd.f32 %v3051_v58, %v3046_v51 }
 0x403   :  { %v1674_v47 = vpop.f32.mrb[44].mxu0  ;;  %v2220_v62 = vpop.f32.mrb[64].mxu1 }
 0x404   :  { %v3058_v6 = vadd.f32 %v1674_v47, %v2976_v59  ;;  %v1676_v63 = vpop.f32.mrb[45].mxu0  ;;  %v1773_v7 = vpop.f32.mrb[65].mxu1  ;;  %v3070_v57 = vadd.f32 %v2220_v62, %v3055_v61 }
 0x405   :  { %v3061_v9 = vadd.f32 %v1676_v63, %v2984_v15  ;;  %v3064_v10 = vadd.f32 %v1773_v7, %v3055_v61  ;;  %v1678_v11 = vpop.f32.mrb[46].mxu0  ;;  %v2221_v12 = vpop.f32.mrb[66].mxu1 }
 0x406   :  { %v3067_v13 = vadd.f32 %v1678_v11, %v2976_v59  ;;  %v1680_v48 = vpop.f32.mrb[47].mxu0  ;;  %v1776_v14 = vpop.f32.mrb[67].mxu1  ;;  %v3082_v19 = vadd.f32 %v2221_v12, %v3055_v61 }
 0x407   :  { %v1844_v0 = vadd.f32 %v3061_v9, %v3058_v6  ;;  %v3075_v16 = vadd.f32 %v1680_v48, %v2984_v15  ;;  %v3078_v17 = vadd.f32 %v1776_v14, %v3055_v61  ;;  %v1837_v18 = vadd.f32 %v1836_v56, %v3064_v10 }
 0x409   :  { %v1848_v52 = vadd.f32 %v3075_v16, %v3067_v13  ;;  %v1845_v1 = vadd.f32 %v1844_v0, %v3070_v57  ;;  %1838 = vadd.xlane.f32.xlu0 %v1837_v18  ;;  %v1841_v20 = vadd.f32 %v1840_v60, %v3078_v17 }
 0x40b   :  { %v1684_v3 = vpop.f32.mrb[48].mxu0  ;;  %v1849_v23 = vadd.f32 %v1848_v52, %v3082_v19  ;;  %1842 = vadd.xlane.f32.xlu1 %v1841_v20 }
 0x40c   :  { %v3090_v26 = vadd.f32 %v1684_v3, %v2976_v59  ;;  %v1686_v29 = vpop.f32.mrb[49].mxu0 }
 0x40d   :  { %v3093_v30 = vadd.f32 %v1686_v29, %v2984_v15  ;;  %v1688_v5 = vpop.f32.mrb[50].mxu0  ;;  %1846 = vadd.xlane.f32.xlu0 %v1845_v1 }
 0x40e   :  { %v3096_v36 = vadd.f32 %v1688_v5, %v2976_v59  ;;  %v1690_v54 = vpop.f32.mrb[51].mxu0 }
 0x40f   :  { %v1852_v32 = vadd.f32 %v3093_v30, %v3090_v26  ;;  %v3101_v35 = vadd.f32 %v1690_v54, %v2984_v15  ;;  %1850 = vadd.xlane.f32.xlu1 %v1849_v23 }
 0x411   :  { %v1856_v37 = vadd.f32 %v3101_v35, %v3096_v36 }
 0x413   :  { %v1694_v8 = vpop.f32.mrb[52].mxu0  ;;  %v2224_v43 = vpop.f32.mrb[68].mxu1 }
 0x414   :  { %v3106_v45 = vadd.f32 %v1694_v8, %v2976_v59  ;;  %v1696_v49 = vpop.f32.mrb[53].mxu0  ;;  %v1789_v50 = vpop.f32.mrb[69].mxu1  ;;  %v3118_v11 = vadd.f32 %v2224_v43, %v3055_v61 }
 0x415   :  { %v3109_v55 = vadd.f32 %v1696_v49, %v2984_v15  ;;  %v3112_v56 = vadd.f32 %v1789_v50, %v3055_v61  ;;  %v1698_v60 = vpop.f32.mrb[54].mxu0  ;;  %v2225_v47 = vpop.f32.mrb[70].mxu1 }
 0x416   :  { %v3115_v62 = vadd.f32 %v1698_v60, %v2976_v59  ;;  %v1700_v63 = vpop.f32.mrb[55].mxu0  ;;  %v1792_v7 = vpop.f32.mrb[71].mxu1  ;;  %v3130_v18 = vadd.f32 %v2225_v47, %v3055_v61 }
 0x417   :  { %v1860_v12 = vadd.f32 %v3109_v55, %v3106_v45  ;;  %v3123_v48 = vadd.f32 %v1700_v63, %v2984_v15  ;;  %v3126_v14 = vadd.f32 %v1792_v7, %v3055_v61  ;;  %v1853_v0 = vadd.f32 %v1852_v32, %v3112_v56 }
 0x419   :  { %v1864_v52 = vadd.f32 %v3123_v48, %v3115_v62  ;;  %v1861_v1 = vadd.f32 %v1860_v12, %v3118_v11  ;;  %1854 = vadd.xlane.f32.xlu0 %v1853_v0  ;;  %v1857_v20 = vadd.f32 %v1856_v37, %v3126_v14 }
 0x41b   :  { %v1704_v3 = vpop.f32.mrb[56].mxu0  ;;  %v1865_v23 = vadd.f32 %v1864_v52, %v3130_v18  ;;  %1858 = vadd.xlane.f32.xlu1 %v1857_v20 }
 0x41c   :  { %v3138_v29 = vadd.f32 %v1704_v3, %v2976_v59  ;;  %v1706_v5 = vpop.f32.mrb[57].mxu0 }
 0x41d   :  { %v3141_v54 = vadd.f32 %v1706_v5, %v2984_v15  ;;  %v1708_v32 = vpop.f32.mrb[58].mxu0  ;;  %1862 = vadd.xlane.f32.xlu0 %v1861_v1 }
 0x41e   :  { %v3144_v8 = vadd.f32 %v1708_v32, %v2976_v59  ;;  %v1710_v43 = vpop.f32.mrb[59].mxu0 }
 0x41f   :  { %v1868_v37 = vadd.f32 %v3141_v54, %v3138_v29  ;;  %v3149_v49 = vadd.f32 %v1710_v43, %v2984_v15  ;;  %1866 = vadd.xlane.f32.xlu1 %v1865_v23 }
 0x421   :  { %v1872_v50 = vadd.f32 %v3149_v49, %v3144_v8 }
 0x423   :  { %v1714_v60 = vpop.f32.mrb[60].mxu0  ;;  %v2228_v47 = vpop.f32.mrb[72].mxu1 }
 0x424   :  { %v3154_v63 = vadd.f32 %v1714_v60, %v2976_v59  ;;  %v1716_v7 = vpop.f32.mrb[61].mxu0  ;;  %v1805_v12 = vpop.f32.mrb[73].mxu1  ;;  %v3166_v32 = vadd.f32 %v2228_v47, %v3055_v61 }
 0x425   :  { %v3157_v0 = vadd.f32 %v1716_v7, %v2984_v15  ;;  %v3160_v52 = vadd.f32 %v1805_v12, %v3055_v61  ;;  %v1718_v1 = vpop.f32.mrb[62].mxu0  ;;  %v2229_v20 = vpop.f32.mrb[74].mxu1 }
 0x426   :  { %3446 = vst [vmem:[#allocation12_spill] sm:$0xff] %v3154_v63  ;;  %v3163_v3 = vadd.f32 %v1718_v1, %v2976_v59  ;;  %v1720_v23 = vpop.f32.mrb[63].mxu0  ;;  %v1808_v5 = vpop.f32.mrb[75].mxu1  ;;  %3449 = vst [vmem:[#allocation15_spill] sm:$0xff] %v3166_v32  ;;  %v3178_v28 = vadd.f32 %v2229_v20, %v3055_v61 }
 0x427   :  { %3447 = vst [vmem:[#allocation13_spill] sm:$0xff] %v3157_v0  ;;  %v1876_v43 = vadd.f32 %v3157_v0, %v3154_v63  ;;  %v3171_v60 = vadd.f32 %v1720_v23, %v2984_v15  ;;  %v3174_v7 = vadd.f32 %v1808_v5, %v3055_v61  ;;  %v1869_v12 = vadd.f32 %v1868_v37, %v3160_v52 }
 0x428   :  { %3448 = vst [vmem:[#allocation14_spill] sm:$0xff] %v3163_v3  ;;  %3451 = vst [vmem:[#allocation17_spill] sm:$0xff] %v3178_v28 }
 0x429   :  { %3450 = vst [vmem:[#allocation16_spill] sm:$0xff] %v3171_v60  ;;  %v1880_v59 = vadd.f32 %v3171_v60, %v3163_v3  ;;  %v1877_v47 = vadd.f32 %v1876_v43, %v3166_v32  ;;  %1870 = vadd.xlane.f32.xlu0 %v1869_v12  ;;  %v1873_v1 = vadd.f32 %v1872_v50, %v3174_v7 }
 0x42b   :  { %v2216_v27 = vpop.f32.mrb[64].mxu0  ;;  %v1881_v15 = vadd.f32 %v1880_v59, %v3178_v28  ;;  %1874 = vadd.xlane.f32.xlu1 %v1873_v1 }
 0x42c   :  { %v1766_v23 = vadd.f32 %v2216_v27, %v3055_v61  ;;  %v1757_v5 = vpop.f32.mrb[65].mxu0 }
 0x42d   :  { %v1758_v37 = vadd.f32 %v1757_v5, %v3055_v61  ;;  %v2217_v0 = vpop.f32.mrb[66].mxu0 }
 0x42e   :  { %v3188_v20 = vadd.f32 %v1766_v23, %v3013_v4  ;;  %v1769_v60 = vadd.f32 %v2217_v0, %v3055_v61  ;;  %v1760_v3 = vpop.f32.mrb[67].mxu0  ;;  %v1829_v43 = vadd.f32 %v3024_v38, %v1766_v23  ;;  %v1386_v38 = vpop.xlane.xlu1 %1385 }
 0x42f   :  { %v3193_v50 = vadd.f32 %v1758_v37, %v2987_v31  ;;  %v1761_v12 = vadd.f32 %v1760_v3, %v3055_v61  ;;  %v1821_v59 = vadd.f32 %v2998_v24, %v1758_v37  ;;  %v1384_v31 = vpop.xlane.xlu0 %1383 }
 0x430   :  { %v3198_v27 = vadd.f32 %v1769_v60, %v3018_v33  ;;  %1830 = vadd.xlane.f32.xlu0 %v1829_v43  ;;  %v1833_v1 = vadd.f32 %v3033_v41, %v1769_v60 }
 0x431   :  { %3452 = vst [vmem:[#allocation18_spill] sm:$0xff] %v3193_v50  ;;  %v3202_v4 = vadd.f32 %v1761_v12, %v2992_v21  ;;  %v1825_v0 = vadd.f32 %v3007_v53, %v1761_v12 }
 0x432   :  { %1834 = vadd.xlane.f32.xlu1 %v1833_v1  ;;  %v1390_v24 = vpop.xlane.xlu1 %1389 }
 0x433   :  { %3453 = vst [vmem:[#allocation19_spill] sm:$0xff] %v3202_v4  ;;  %v1388_v61 = vpop.xlane.xlu0 %1387 }
 0x434   :  { %1822 = vadd.xlane.f32.xlu0 %v1821_v59 }
 0x436   :  { %1826 = vadd.xlane.f32.xlu1 %v1825_v0  ;;  %v1394_v33 = vpop.xlane.xlu1 %1393  ;;  %v1415_v0 = vadd.f32 %v2981_v2, %v1388_v61 }
 0x437   :  { %v1392_v3 = vpop.xlane.xlu0 %1391 }
 0x438   :  { %1878 = vadd.xlane.f32.xlu0 %v1877_v47  ;;  %v1413_v47 = vadd.f32 %v2981_v2, %v1384_v31 }
 0x43a   :  { %1882 = vadd.xlane.f32.xlu1 %v1881_v15  ;;  %v3205_v5 = vpop.xlane.xlu1 %1397  ;;  %v1414_v15 = vadd.f32 %v2981_v2, %v1386_v38  ;;  %v1912_v43 = vadd.f32 %v3039_v44, %v1413_v47  ;;  %v1913_v12 = vadd.f32 %v3042_v46, %v1413_v47  ;;  %v1914_v59 = vadd.f32 %v3064_v10, %v1413_v47 }
 0x43b   :  { %v1396_v23 = vpop.xlane.xlu0 %1395  ;;  %v1416_v44 = vadd.f32 %v2981_v2, %v1390_v24  ;;  %v1918_v46 = vadd.f32 %v3058_v6, %v1415_v0  ;;  %v1920_v10 = vadd.f32 %v3070_v57, %v1415_v0  ;;  %v1919_v47 = vadd.f32 %v3061_v9, %v1415_v0 }
 0x43c   :  { %v1915_v28 = vadd.f32 %v3046_v51, %v1414_v15  ;;  %v1916_v4 = vadd.f32 %v3051_v58, %v1414_v15  ;;  %v1917_v32 = vadd.f32 %v3078_v17, %v1414_v15  ;;  %v1418_v15 = vadd.f32 %v2981_v2, %v1394_v33 }
 0x43d   :  { %v1921_v57 = vadd.f32 %v3067_v13, %v1416_v44  ;;  %v1923_v9 = vadd.f32 %v3082_v19, %v1416_v44  ;;  %v1419_v0 = vadd.f32 %v2981_v2, %v1396_v23 }
 0x43e   :  { %v3209_v21 = vpop.xlane.xlu1 %1401 }
 0x43f   :  { %v3207_v41 = vpop.xlane.xlu0 %1399  ;;  %v1931_v23 = vadd.f32 %v3109_v55, %v1419_v0 }
 0x442   :  { %v3213_v53 = vpop.xlane.xlu1 %1405 }
 0x443   :  { %v3211_v60 = vpop.xlane.xlu0 %1403  ;;  %3454 = vst [vmem:[#allocation20_spill] sm:$0xff] %v3213_v53 }
 0x496   :  { %v1839_v37 = vpop.xlane.xlu0 %1838 }
 0x497   :  { %v1888_v1 = vmul.f32 0.0035714286, %v1839_v37 }
 0x498   :  { %v1843_v63 = vpop.xlane.xlu1 %1842 }
 0x499   :  { %v1960_v31 = vsub.f32 %v1912_v43, %v1888_v1  ;;  %v1961_v53 = vsub.f32 %v1913_v12, %v1888_v1  ;;  %v1962_v38 = vsub.f32 %v1914_v59, %v1888_v1  ;;  %v1889_v50 = vmul.f32 0.0035714286, %v1843_v63 }
 0x49a   :  { %v1847_v61 = vpop.xlane.xlu0 %1846  ;;  %v1922_v63 = vadd.f32 %v3075_v16, %v1416_v44  ;;  %v1929_v44 = vadd.f32 %v3126_v14, %v1418_v15 }
 0x49b   :  { %2008 = vst [vmem:[%s3437_s13 + $0x60] sm:$0xff] %v1960_v31  ;;  %2009 = vst [vmem:[%s3437_s13 + $0x68] sm:$0xff] %v1961_v53  ;;  %v1963_v51 = vsub.f32 %v1915_v28, %v1889_v50  ;;  %v1964_v58 = vsub.f32 %v1916_v4, %v1889_v50  ;;  %v1965_v6 = vsub.f32 %v1917_v32, %v1889_v50  ;;  %v1890_v17 = vmul.f32 0.0035714286, %v1847_v61 }
 0x49c   :  { %2010 = vst [vmem:[%s3437_s13 + $0x70] sm:$0xff] %v1962_v38  ;;  %v1851_v24 = vpop.xlane.xlu1 %1850  ;;  %v1417_v53 = vadd.f32 %v2981_v2, %v1392_v3  ;;  %v1927_v31 = vadd.f32 %v3096_v36, %v1418_v15  ;;  %v1928_v38 = vadd.f32 %v3101_v35, %v1418_v15 }
 0x49d   :  { %2011 = vst [vmem:[%s3437_s13 + $0x78] sm:$0xff] %v1963_v51  ;;  %2012 = vst [vmem:[%s3437_s13 + $0x80] sm:$0xff] %v1964_v58  ;;  %v1966_v28 = vsub.f32 %v1918_v46, %v1890_v17  ;;  %v1967_v32 = vsub.f32 %v1919_v47, %v1890_v17  ;;  %v1968_v13 = vsub.f32 %v1920_v10, %v1890_v17  ;;  %v1891_v50 = vmul.f32 0.0035714286, %v1851_v24 }
 0x49e   :  { %2013 = vst [vmem:[%s3437_s13 + $0x88] sm:$0xff] %v1965_v6  ;;  %v1924_v43 = vadd.f32 %v3090_v26, %v1417_v53  ;;  %v1925_v12 = vadd.f32 %v3093_v30, %v1417_v53  ;;  %v1926_v59 = vadd.f32 %v3112_v56, %v1417_v53  ;;  %v1420_v26 = vadd.f32 %v2981_v2, %v3205_v5 }
 0x49f   :  { %2014 = vst [vmem:[%s3437_s13 + $0x90] sm:$0xff] %v1966_v28  ;;  %2015 = vst [vmem:[%s3437_s13 + $0x98] sm:$0xff] %v1967_v32  ;;  %v1969_v16 = vsub.f32 %v1921_v57, %v1891_v50  ;;  %v1970_v19 = vsub.f32 %v1922_v63, %v1891_v50  ;;  %v1971_v4 = vsub.f32 %v1923_v9, %v1891_v50 }
 0x4a0   :  { %2016 = vst [vmem:[%s3437_s13 + $0xa0] sm:$0xff] %v1968_v13  ;;  %v1930_v30 = vadd.f32 %v3106_v45, %v1419_v0  ;;  %v1932_v56 = vadd.f32 %v3118_v11, %v1419_v0  ;;  %v1933_v11 = vadd.f32 %v3115_v62, %v1420_v26  ;;  %v1935_v55 = vadd.f32 %v3130_v18, %v1420_v26 }
 0x4a1   :  { %2017 = vst [vmem:[%s3437_s13 + $0xa8] sm:$0xff] %v1969_v16  ;;  %2018 = vst [vmem:[%s3437_s13 + $0xb0] sm:$0xff] %v1970_v19  ;;  %v1934_v5 = vadd.f32 %v3123_v48, %v1420_v26  ;;  %v1421_v9 = vadd.f32 %v2981_v2, %v3207_v41  ;;  %v1422_v63 = vadd.f32 %v2981_v2, %v3209_v21  ;;  %v3458_v26 = vld [vmem:[#allocation15_spill] sm:$0xff] }
 0x4a2   :  { %2019 = vst [vmem:[%s3437_s13 + $0xb8] sm:$0xff] %v1971_v4 }
 0x4a3   :  { %v1936_v28 = vadd.f32 %v3138_v29, %v1421_v9  ;;  %v1937_v32 = vadd.f32 %v3141_v54, %v1421_v9  ;;  %v1938_v13 = vadd.f32 %v3160_v52, %v1421_v9  ;;  %v1939_v16 = vadd.f32 %v3144_v8, %v1422_v63 }
 0x4a4   :  { %v1940_v19 = vadd.f32 %v3149_v49, %v1422_v63  ;;  %v1941_v4 = vadd.f32 %v3174_v7, %v1422_v63 }
 0x4a6   :  { %v1855_v37 = vpop.xlane.xlu0 %1854 }
 0x4a7   :  { %v1892_v1 = vmul.f32 0.0035714286, %v1855_v37 }
 0x4a8   :  { %v1859_v46 = vpop.xlane.xlu1 %1858 }
 0x4a9   :  { %v1972_v3 = vsub.f32 %v1924_v43, %v1892_v1  ;;  %v1973_v10 = vsub.f32 %v1925_v12, %v1892_v1  ;;  %v1974_v33 = vsub.f32 %v1926_v59, %v1892_v1  ;;  %v1893_v47 = vmul.f32 0.0035714286, %v1859_v46 }
 0x4aa   :  { %v1863_v61 = vpop.xlane.xlu0 %1862 }
 0x4ab   :  { %2020 = vst [vmem:[%s3437_s13 + $0xc0] sm:$0xff] %v1972_v3  ;;  %2021 = vst [vmem:[%s3437_s13 + $0xc8] sm:$0xff] %v1973_v10  ;;  %v1975_v36 = vsub.f32 %v1927_v31, %v1893_v47  ;;  %v1976_v35 = vsub.f32 %v1928_v38, %v1893_v47  ;;  %v1977_v45 = vsub.f32 %v1929_v44, %v1893_v47  ;;  %v1894_v14 = vmul.f32 0.0035714286, %v1863_v61  ;;  %v3456_v3 = vld [vmem:[#allocation20_spill] sm:$0xff] }
 0x4ac   :  { %2022 = vst [vmem:[%s3437_s13 + $0xd0] sm:$0xff] %v1974_v33  ;;  %v1867_v51 = vpop.xlane.xlu1 %1866  ;;  %v1423_v38 = vadd.f32 %v2981_v2, %v3211_v60  ;;  %v1424_v10 = vadd.f32 %v2981_v2, %v3456_v3  ;;  %v3457_v33 = vld [vmem:[#allocation12_spill] sm:$0xff]  ;;  %v3460_v2 = vld [vmem:[#allocation10_spill] sm:$0xff] }
 0x4ad   :  { %2023 = vst [vmem:[%s3437_s13 + $0xd8] sm:$0xff] %v1975_v36  ;;  %2024 = vst [vmem:[%s3437_s13 + $0xe0] sm:$0xff] %v1976_v35  ;;  %v1978_v58 = vsub.f32 %v1930_v30, %v1894_v14  ;;  %v1979_v6 = vsub.f32 %v1931_v23, %v1894_v14  ;;  %v1980_v62 = vsub.f32 %v1932_v56, %v1894_v14  ;;  %v1895_v17 = vmul.f32 0.0035714286, %v1867_v51  ;;  %v3459_v56 = vld [vmem:[#allocation13_spill] sm:$0xff]  ;;  %v3462_v35 = vld [vmem:[#allocation19_spill] sm:$0xff] }
 0x4ae   :  { %2025 = vst [vmem:[%s3437_s13 + $0xe8] sm:$0xff] %v1977_v45  ;;  %v1942_v47 = vadd.f32 %v3457_v33, %v1423_v38  ;;  %v1944_v30 = vadd.f32 %v3458_v26, %v1423_v38  ;;  %v1943_v23 = vadd.f32 %v3459_v56, %v1423_v38 }
 0x4af   :  { %2026 = vst [vmem:[%s3437_s13 + $0xf0] sm:$0xff] %v1978_v58  ;;  %2027 = vst [vmem:[%s3437_s13 + $0xf8] sm:$0xff] %v1979_v6  ;;  %v1981_v48 = vsub.f32 %v1933_v11, %v1895_v17  ;;  %v1982_v18 = vsub.f32 %v1934_v5, %v1895_v17  ;;  %v1983_v57 = vsub.f32 %v1935_v55, %v1895_v17  ;;  %v3463_v11 = vld [vmem:[#allocation14_spill] sm:$0xff]  ;;  %v3464_v5 = vld [vmem:[#allocation17_spill] sm:$0xff] }
 0x4b0   :  { %2028 = vst [vmem:[%s3437_s13 + $0x100] sm:$0xff] %v1980_v62  ;;  %v1945_v55 = vadd.f32 %v3463_v11, %v1424_v10  ;;  %v1947_v51 = vadd.f32 %v3464_v5, %v1424_v10  ;;  %v3465_v58 = vld [vmem:[#allocation16_spill] sm:$0xff] }
 0x4b1   :  { %2029 = vst [vmem:[%s3437_s13 + $0x108] sm:$0xff] %v1981_v48  ;;  %2030 = vst [vmem:[%s3437_s13 + $0x110] sm:$0xff] %v1982_v18  ;;  %v1946_v6 = vadd.f32 %v3465_v58, %v1424_v10 }
 0x4b2   :  { %2031 = vst [vmem:[%s3437_s13 + $0x118] sm:$0xff] %v1983_v57 }
 0x4b6   :  { %v1871_v24 = vpop.xlane.xlu0 %1870 }
 0x4b7   :  { %v1896_v50 = vmul.f32 0.0035714286, %v1871_v24 }
 0x4b8   :  { %v1875_v53 = vpop.xlane.xlu1 %1874 }
 0x4b9   :  { %v1984_v15 = vsub.f32 %v1936_v28, %v1896_v50  ;;  %v1985_v41 = vsub.f32 %v1937_v32, %v1896_v50  ;;  %v1986_v37 = vsub.f32 %v1938_v13, %v1896_v50  ;;  %v1897_v43 = vmul.f32 0.0035714286, %v1875_v53 }
 0x4bb   :  { %2032 = vst [vmem:[%s3437_s13 + $0x120] sm:$0xff] %v1984_v15  ;;  %2033 = vst [vmem:[%s3437_s13 + $0x128] sm:$0xff] %v1985_v41  ;;  %v1987_v29 = vsub.f32 %v1939_v16, %v1897_v43  ;;  %v1988_v54 = vsub.f32 %v1940_v19, %v1897_v43  ;;  %v1989_v8 = vsub.f32 %v1941_v4, %v1897_v43 }
 0x4bc   :  { %2034 = vst [vmem:[%s3437_s13 + $0x130] sm:$0xff] %v1986_v37 }
 0x4bd   :  { %v1831_v49 = vpop.xlane.xlu0 %1830  ;;  %2035 = vst [vmem:[%s3437_s13 + $0x138] sm:$0xff] %v1987_v29  ;;  %2036 = vst [vmem:[%s3437_s13 + $0x140] sm:$0xff] %v1988_v54 }
 0x4be   :  { %2037 = vst [vmem:[%s3437_s13 + $0x148] sm:$0xff] %v1989_v8  ;;  %v1886_v52 = vmul.f32 0.0035714286, %v1831_v49 }
 0x4bf   :  { %v1835_v7 = vpop.xlane.xlu1 %1834 }
 0x4c0   :  { %v1954_v21 = vsub.f32 %v3021_v34, %v1886_v52  ;;  %v1955_v12 = vsub.f32 %v3027_v39, %v1886_v52  ;;  %v1956_v59 = vsub.f32 %v3188_v20, %v1886_v52  ;;  %v1887_v1 = vmul.f32 0.0035714286, %v1835_v7 }
 0x4c1   :  { %v1823_v0 = vpop.xlane.xlu0 %1822 }
 0x4c2   :  { %2002 = vst [vmem:[%s3437_s13 + $0x30] sm:$0xff] %v1954_v21  ;;  %2003 = vst [vmem:[%s3437_s13 + $0x38] sm:$0xff] %v1955_v12  ;;  %v1957_v34 = vsub.f32 %v3031_v40, %v1887_v1  ;;  %v1958_v39 = vsub.f32 %v3036_v42, %v1887_v1  ;;  %v1959_v20 = vsub.f32 %v3198_v27, %v1887_v1  ;;  %v1884_v31 = vmul.f32 0.0035714286, %v1823_v0  ;;  %v3455_v27 = vld [vmem:[#allocation18_spill] sm:$0xff] }
 0x4c3   :  { %2004 = vst [vmem:[%s3437_s13 + $0x40] sm:$0xff] %v1956_v59  ;;  %v1827_v44 = vpop.xlane.xlu1 %1826 }
 0x4c4   :  { %2005 = vst [vmem:[%s3437_s13 + $0x48] sm:$0xff] %v1957_v34  ;;  %2006 = vst [vmem:[%s3437_s13 + $0x50] sm:$0xff] %v1958_v39  ;;  %v1948_v40 = vsub.f32 %v2995_v22, %v1884_v31  ;;  %v1949_v42 = vsub.f32 %v3001_v25, %v1884_v31  ;;  %v1950_v46 = vsub.f32 %v3455_v27, %v1884_v31  ;;  %v1885_v60 = vmul.f32 0.0035714286, %v1827_v44  ;;  %v3461_v25 = vld [vmem:[#allocation11_spill] sm:$0xff] }
 0x4c5   :  { %2007 = vst [vmem:[%s3437_s13 + $0x58] sm:$0xff] %v1959_v20  ;;  %v1879_v61 = vpop.xlane.xlu0 %1878 }
 0x4c6   :  { %1996 = vst [vmem:[%s3437_s13] sm:$0xff] %v1948_v40  ;;  %1997 = vst [vmem:[%s3437_s13 + $0x8] sm:$0xff] %v1949_v42  ;;  %v1951_v22 = vsub.f32 %v3460_v2, %v1885_v60  ;;  %v1952_v36 = vsub.f32 %v3461_v25, %v1885_v60  ;;  %v1953_v45 = vsub.f32 %v3462_v35, %v1885_v60  ;;  %v1898_v14 = vmul.f32 0.0035714286, %v1879_v61 }
 0x4c7   :  { %1998 = vst [vmem:[%s3437_s13 + $0x10] sm:$0xff] %v1950_v46  ;;  %v1883_v62 = vpop.xlane.xlu1 %1882 }
 0x4c8   :  { %1999 = vst [vmem:[%s3437_s13 + $0x18] sm:$0xff] %v1951_v22  ;;  %2000 = vst [vmem:[%s3437_s13 + $0x20] sm:$0xff] %v1952_v36  ;;  %v1990_v17 = vsub.f32 %v1942_v47, %v1898_v14  ;;  %v1991_v48 = vsub.f32 %v1943_v23, %v1898_v14  ;;  %v1992_v18 = vsub.f32 %v1944_v30, %v1898_v14  ;;  %v1899_v57 = vmul.f32 0.0035714286, %v1883_v62 }
 0x4c9   :  { %2001 = vst [vmem:[%s3437_s13 + $0x28] sm:$0xff] %v1953_v45 }
 0x4ca   :  { %2038 = vst [vmem:[%s3437_s13 + $0x150] sm:$0xff] %v1990_v17  ;;  %2039 = vst [vmem:[%s3437_s13 + $0x158] sm:$0xff] %v1991_v48  ;;  %v1993_v9 = vsub.f32 %v1945_v55, %v1899_v57  ;;  %v1994_v63 = vsub.f32 %v1946_v6, %v1899_v57  ;;  %v1995_v24 = vsub.f32 %v1947_v51, %v1899_v57 }
 0x4cb   :  { %2040 = vst [vmem:[%s3437_s13 + $0x160] sm:$0xff] %v1992_v18 }
 0x4cc   :  { %2041 = vst [vmem:[%s3437_s13 + $0x168] sm:$0xff] %v1993_v9  ;;  %2042 = vst [vmem:[%s3437_s13 + $0x170] sm:$0xff] %v1994_v63 }
 0x4cd   :  { %2043 = vst [vmem:[%s3437_s13 + $0x178] sm:$0xff] %v1995_v24 }
 0x4ce   :  { %2048 = vsyncpa [#allocation4], 1 }
 0x4cf   :  { %2049 = vsyncpa [#allocation6], 1 }

</bundles_post_ra>
